<compile_context>
chip_gen: v7x
topology: tpu7x:2x2x1
jax: 0.10.0
libtpu: 0.0.40
codegen_flags: <defaults>
</compile_context>

<pallas_src>
import jax
import jax.numpy as jnp
from jax.experimental import pallas as pl
from jax.experimental.pallas import tpu as pltpu

KSIZE = 7   # spatial-attention conv kernel size
PAD = 3     # padding for kernel_size=7


# --------------------------------------------------------------------------
# Kernel: one grid step handles a (block_b, C, HW) lane-dense tile.
# --------------------------------------------------------------------------
def cbam_kernel(x_ref, w1t_ref, w2t_ref, tsp_ref, o_ref):
    x = x_ref[...].astype(jnp.float32)                    # (Bt, C, HW)
    bt = x.shape[0]

    # ---------------- Channel attention ----------------
    avg_c = jnp.mean(x, axis=2)                           # (Bt, C)  lane reduce
    max_c = jnp.max(x, axis=2)                            # (Bt, C)
    pooled = jnp.concatenate([avg_c, max_c], axis=0)      # (2*Bt, C)

    # Fused shared MLP: one push/pop pair on the MXU instead of two.
    h = jnp.maximum(
        jnp.dot(pooled, w1t_ref[...], preferred_element_type=jnp.float32), 0.0)
    z = jnp.dot(h, w2t_ref[...], preferred_element_type=jnp.float32)   # (2*Bt, C)
    att_c = jax.nn.sigmoid(z[:bt] + z[bt:])               # (Bt, C)
    xc = att_c[:, :, None] * x                            # (Bt, C, HW)

    # ---------------- Spatial attention ----------------
    avg_s = jnp.mean(xc, axis=1)                          # (Bt, HW)  sublane reduce
    max_s = jnp.max(xc, axis=1)                           # (Bt, HW)
    sp = jnp.concatenate([avg_s, max_s], axis=1)          # (Bt, 2*HW)

    # 7x7 "same" conv on [avg;max] expressed as one dense (2*HW, HW) matmul (MXU).
    conv = jnp.dot(sp, tsp_ref[...], preferred_element_type=jnp.float32)  # (Bt, HW)
    att_s = jax.nn.sigmoid(conv)

    o_ref[...] = (xc * att_s[:, None, :]).astype(o_ref.dtype)


# --------------------------------------------------------------------------
# Wrapper helpers
# --------------------------------------------------------------------------
def _conv_to_matmul(w2d, H, W):
    """Lower a KSIZE x KSIZE zero-padded 'same' conv (1 in-channel, PyTorch
    cross-correlation semantics) to a dense (HW, HW) matrix T such that
    conv(map)[p] = sum_q map[q] * T[q, p]."""
    HW = H * W
    idx = jnp.arange(HW)
    pi, pj = idx // W, idx % W                             # output pixel coords
    qi, qj = idx // W, idx % W                             # input pixel coords
    di = qi[:, None] - pi[None, :]                         # (HW_in, HW_out)
    dj = qj[:, None] - pj[None, :]
    valid = (jnp.abs(di) <= PAD) & (jnp.abs(dj) <= PAD)
    ki = jnp.clip(di + PAD, 0, KSIZE - 1)
    kj = jnp.clip(dj + PAD, 0, KSIZE - 1)
    return jnp.where(valid, w2d[ki, kj], 0.0).astype(jnp.float32)


def _physical_vmem_bytes():
    """Per-TensorCore VMEM; conservative fallback = v7x's 64 MiB."""
    phys = 64 << 20
    try:
        info = pltpu.get_tpu_info()
        for attr in ("vmem_capacity_bytes", "vmem_bytes", "vmem_size_bytes"):
            v = getattr(info, attr, None)
            if v:
                phys = int(v)
                break
    except Exception:
        pass
    return phys


def _choose_block_b(B, C, HW, mid, io_itemsize, vmem_limit):
    """Batch tile sized from the VMEM budget:
       2 pipeline buffers x (input tile + output tile)  @ io dtype
     + ~3 f32 in-kernel temporaries (x, xc, pre-store product)
     + double-buffered resident weight blocks
     and keep >= 2 grid steps (when B > 1) so v7x's two TCs share the grid."""
    io_tile_b = C * HW * io_itemsize          # one batch row of the in/out tile
    f32_tile_b = C * HW * 4
    per_b = 2 * 2 * io_tile_b + 3 * f32_tile_b
    weight_bytes = 2 * 4 * (C * mid + mid * C + 2 * HW * HW)   # double-buffered f32
    budget = max(vmem_limit - weight_bytes - (4 << 20), 1 << 20)
    cap = max(1, budget // per_b)
    bt = min(B, cap)
    if B > 1:
        bt = min(bt, pl.cdiv(B, 2))           # >= 2 grid steps for 2-TC chips
    return max(1, int(bt))


def cbam_pallas(x, w1, w2, wsp, *, block_b=None, io_dtype=None):
    """CBAM forward.
    x: (B,C,H,W); w1: (mid,C); w2: (C,mid); wsp: (1,2,7,7) (OIHW, bias=False).
    io_dtype: optional HBM dtype for x/out (e.g. jnp.bfloat16) to halve DMA bytes;
    in-kernel arithmetic stays f32."""
    B, C, H, W = x.shape
    HW = H * W
    mid = w1.shape[0]

    if HW > 1024:
        # TODO(synk): for large feature maps switch the dense (2*HW,HW) conv-as-matmul
        # to a banded / pltpu.roll shifted-add form; dense form would blow VMEM.
        raise NotImplementedError(f"dense spatial-conv matrix too large for HW={HW}")

    io_dt = jnp.dtype(io_dtype) if io_dtype is not None else jnp.dtype(x.dtype)

    phys_vmem = _physical_vmem_bytes()
    vmem_limit = int((phys_vmem * 3) // 4)     # 96 MiB on v5e/v6e, 48 MiB on v7x

    if block_b is None:
        block_b = _choose_block_b(B, C, HW, mid, io_dt.itemsize, vmem_limit)

    # Weight prep (all small, kept f32 for MXU-accumulation accuracy).
    w1t = jnp.transpose(w1).astype(jnp.float32)            # (C, mid)
    w2t = jnp.transpose(w2).astype(jnp.float32)            # (mid, C)
    t_sp = jnp.concatenate(                                 # (2*HW, HW): [T_avg; T_max]
        [_conv_to_matmul(wsp[0, 0], H, W),
         _conv_to_matmul(wsp[0, 1], H, W)], axis=0)

    # Lane-dense layout + optional bf16 HBM traffic.  (In the full model the
    # producing layer would emit bf16 directly; here the cast is in the wrapper.)
    x_flat = x.reshape(B, C, HW).astype(io_dt)

    # Pad the batch so B is a multiple of block_b (zero rows are harmless).
    n_steps = pl.cdiv(B, block_b)
    Bp = n_steps * block_b
    if Bp != B:
        x_flat = jnp.pad(x_flat, ((0, Bp - B), (0, 0), (0, 0)))

    out_flat = pl.pallas_call(
        cbam_kernel,
        out_shape=jax.ShapeDtypeStruct((Bp, C, HW), io_dt),
        grid=(n_steps,),
        in_specs=[
            pl.BlockSpec((block_b, C, HW), lambda b: (b, 0, 0)),
            pl.BlockSpec((C, mid), lambda b: (0, 0)),
            pl.BlockSpec((mid, C), lambda b: (0, 0)),
            pl.BlockSpec((2 * HW, HW), lambda b: (0, 0)),
        ],
        out_specs=pl.BlockSpec((block_b, C, HW), lambda b: (b, 0, 0)),
        compiler_params=pltpu.CompilerParams(
            dimension_semantics=("parallel",),
            vmem_limit_bytes=vmem_limit),
    )(x_flat, w1t, w2t, t_sp)

    return out_flat[:B].reshape(B, C, H, W)


# --------------------------------------------------------------------------
# Pure-JAX reference matching the PyTorch CBAM forward (bias=False everywhere,
# as in the nn.Module spec).
# --------------------------------------------------------------------------
def cbam_ref(x, w1, w2, wsp):
    avg = jnp.mean(x, axis=(2, 3), keepdims=True)
    mx = jnp.max(x, axis=(2, 3), keepdims=True)

    def fc(v):
        h = jnp.maximum(jnp.einsum('mc,bcij->bmij', w1, v), 0.0)
        return jnp.einsum('cm,bmij->bcij', w2, h)

    att_c = jax.nn.sigmoid(fc(avg) + fc(mx))
    xc = att_c * x
    avg_s = jnp.mean(xc, axis=1, keepdims=True)
    max_s = jnp.max(xc, axis=1, keepdims=True)
    sp = jnp.concatenate([avg_s, max_s], axis=1)            # (B, 2, H, W)
    conv = jax.lax.conv_general_dilated(
        sp, wsp, window_strides=(1, 1), padding=[(PAD, PAD), (PAD, PAD)],
        dimension_numbers=('NCHW', 'OIHW', 'NCHW'))
    return jax.nn.sigmoid(conv) * xc


if __name__ == "__main__":
    B, C, H, W = 8, 32, 16, 16
    reduction_ratio = 16
    mid = C // reduction_ratio                               # = 2

    key = jax.random.PRNGKey(0)
    kx, k1, k2, k3 = jax.random.split(key, 4)
    x = jax.random.normal(kx, (B, C, H, W), jnp.float32)
    # Deterministic synthetic parameters (same shapes as the nn.Module weights):
    w1 = jax.random.normal(k1, (mid, C), jnp.float32) * 0.2   # Conv2d(C, C//r, 1), bias=False
    w2 = jax.random.normal(k2, (C, mid), jnp.float32) * 0.2   # Conv2d(C//r, C, 1), bias=False
    wsp = jax.random.normal(k3, (1, 2, KSIZE, KSIZE), jnp.float32) * 0.1  # Conv2d(2,1,7), bias=False

    ref = cbam_ref(x, w1, w2, wsp)

    # f32 path (exact semantics of the PyTorch module).
    out = jax.block_until_ready(cbam_pallas(x, w1, w2, wsp))
    assert out.shape == (B, C, H, W)
    max_err = float(jnp.max(jnp.abs(out - ref)))
    assert jnp.allclose(out, ref, atol=2e-4, rtol=2e-4), f"max abs err {max_err}"

    # bf16 HBM-traffic path (halved DMA bytes; compute stays f32 in-kernel).
    out_bf16 = jax.block_until_ready(
        cbam_pallas(x, w1, w2, wsp, io_dtype=jnp.bfloat16))
    err_bf16 = float(jnp.max(jnp.abs(out_bf16.astype(jnp.float32) - ref)))
    assert err_bf16 < 0.1, f"bf16 path max abs err {err_bf16}"

    print("KERNEL_OK")
</pallas_src>

<mosaic_0001>
module attributes {stable_mosaic.version = 11 : i64} {
  func.func @cbam_kernel(%arg0: i32, %arg1: memref<4x32x256xf32, #tpu.memory_space<vmem>>, %arg2: memref<32x2xf32, #tpu.memory_space<vmem>>, %arg3: memref<2x32xf32, #tpu.memory_space<vmem>>, %arg4: memref<512x256xf32, #tpu.memory_space<vmem>>, %arg5: memref<4x32x256xf32, #tpu.memory_space<vmem>>) attributes {dimension_semantics = [#tpu.dimension_semantics<parallel>], iteration_bounds = array<i64: 2>, scalar_prefetch = 0 : i64, scratch_operands = 0 : i64, tpu.core_type = #tpu.core_type<tc>, window_params = [{transform_indices = @transform_0, window_bounds = array<i64: 4, 32, 256>}, {pipeline_mode = #tpu.pipeline_mode<synchronous>, transform_indices = @transform_1, window_bounds = array<i64: 32, 2>}, {pipeline_mode = #tpu.pipeline_mode<synchronous>, transform_indices = @transform_2, window_bounds = array<i64: 2, 32>}, {pipeline_mode = #tpu.pipeline_mode<synchronous>, transform_indices = @transform_3, window_bounds = array<i64: 512, 256>}, {transform_indices = @transform_4, window_bounds = array<i64: 4, 32, 256>}]} {
    %c0 = arith.constant 0 : index
    %c0_0 = arith.constant 0 : index
    %c0_1 = arith.constant 0 : index
    %0 = vector.load %arg1[%c0, %c0_0, %c0_1] : memref<4x32x256xf32, #tpu.memory_space<vmem>>, vector<4x32x256xf32>
    %cst = arith.constant dense<0.000000e+00> : vector<4x32xf32>
    %1 = vector.multi_reduction <add>, %0, %cst [2] : vector<4x32x256xf32> to vector<4x32xf32>
    %cst_2 = arith.constant 2.560000e+02 : f32
    %2 = vector.broadcast %cst_2 : f32 to vector<4x32xf32>
    %3 = arith.divf %1, %2 : vector<4x32xf32>
    %cst_3 = arith.constant dense<0xFF800000> : vector<4x32xf32>
    %4 = vector.multi_reduction <maximumf>, %0, %cst_3 [2] : vector<4x32x256xf32> to vector<4x32xf32>
    %5 = tpu.concatenate %3, %4 in 0 : vector<4x32xf32>, vector<4x32xf32> -> vector<8x32xf32>
    %c0_4 = arith.constant 0 : index
    %c0_5 = arith.constant 0 : index
    %6 = vector.load %arg2[%c0_4, %c0_5] : memref<32x2xf32, #tpu.memory_space<vmem>>, vector<32x2xf32>
    %cst_6 = arith.constant dense<0.000000e+00> : vector<8x2xf32>
    %7 = tpu.matmul %5, %6, %cst_6 {dimension_numbers = #tpu.dot_dimension_numbers<[1], [0], [0], [1], [0, 0, 1, 1], [], []>} : vector<8x32xf32>, vector<32x2xf32>, vector<8x2xf32> -> vector<8x2xf32>
    %cst_7 = arith.constant 0.000000e+00 : f32
    %8 = vector.broadcast %cst_7 : f32 to vector<8x2xf32>
    %9 = arith.maximumf %7, %8 : vector<8x2xf32>
    %c0_8 = arith.constant 0 : index
    %c0_9 = arith.constant 0 : index
    %10 = vector.load %arg3[%c0_8, %c0_9] : memref<2x32xf32, #tpu.memory_space<vmem>>, vector<2x32xf32>
    %cst_10 = arith.constant dense<0.000000e+00> : vector<8x32xf32>
    %11 = tpu.matmul %9, %10, %cst_10 {dimension_numbers = #tpu.dot_dimension_numbers<[1], [0], [0], [1], [0, 0, 1, 1], [], []>} : vector<8x2xf32>, vector<2x32xf32>, vector<8x32xf32> -> vector<8x32xf32>
    %12 = vector.extract_strided_slice %11 {offsets = [0, 0], sizes = [4, 32], strides = [1, 1]} : vector<8x32xf32> to vector<4x32xf32>
    %13 = vector.extract_strided_slice %11 {offsets = [4, 0], sizes = [4, 32], strides = [1, 1]} : vector<8x32xf32> to vector<4x32xf32>
    %14 = arith.addf %12, %13 : vector<4x32xf32>
    %15 = arith.negf %14 : vector<4x32xf32>
    %16 = math.exp %15 : vector<4x32xf32>
    %cst_11 = arith.constant 1.000000e+00 : f32
    %17 = vector.broadcast %cst_11 : f32 to vector<4x32xf32>
    %18 = arith.addf %17, %16 : vector<4x32xf32>
    %19 = arith.divf %17, %18 : vector<4x32xf32>
    %20 = vector.shape_cast %19 : vector<4x32xf32> to vector<4x32x1xf32>
    %21 = vector.broadcast %20 : vector<4x32x1xf32> to vector<4x32x256xf32>
    %22 = arith.mulf %21, %0 : vector<4x32x256xf32>
    %cst_12 = arith.constant dense<0.000000e+00> : vector<4x256xf32>
    %23 = vector.multi_reduction <add>, %22, %cst_12 [1] : vector<4x32x256xf32> to vector<4x256xf32>
    %cst_13 = arith.constant 3.200000e+01 : f32
    %24 = vector.broadcast %cst_13 : f32 to vector<4x256xf32>
    %25 = arith.divf %23, %24 : vector<4x256xf32>
    %cst_14 = arith.constant dense<0xFF800000> : vector<4x256xf32>
    %26 = vector.multi_reduction <maximumf>, %22, %cst_14 [1] : vector<4x32x256xf32> to vector<4x256xf32>
    %27 = tpu.concatenate %25, %26 in 1 : vector<4x256xf32>, vector<4x256xf32> -> vector<4x512xf32>
    %c0_15 = arith.constant 0 : index
    %c0_16 = arith.constant 0 : index
    %28 = vector.load %arg4[%c0_15, %c0_16] : memref<512x256xf32, #tpu.memory_space<vmem>>, vector<512x256xf32>
    %cst_17 = arith.constant dense<0.000000e+00> : vector<4x256xf32>
    %29 = tpu.matmul %27, %28, %cst_17 {dimension_numbers = #tpu.dot_dimension_numbers<[1], [0], [0], [1], [0, 0, 1, 1], [], []>} : vector<4x512xf32>, vector<512x256xf32>, vector<4x256xf32> -> vector<4x256xf32>
    %30 = arith.negf %29 : vector<4x256xf32>
    %31 = math.exp %30 : vector<4x256xf32>
    %cst_18 = arith.constant 1.000000e+00 : f32
    %32 = vector.broadcast %cst_18 : f32 to vector<4x256xf32>
    %33 = arith.addf %32, %31 : vector<4x256xf32>
    %34 = arith.divf %32, %33 : vector<4x256xf32>
    %35 = vector.shape_cast %34 : vector<4x256xf32> to vector<4x1x256xf32>
    %36 = vector.broadcast %35 : vector<4x1x256xf32> to vector<4x32x256xf32>
    %37 = arith.mulf %22, %36 : vector<4x32x256xf32>
    %c0_19 = arith.constant 0 : index
    %c0_20 = arith.constant 0 : index
    %c0_21 = arith.constant 0 : index
    %38 = vector.load %arg5[%c0_19, %c0_20, %c0_21] : memref<4x32x256xf32, #tpu.memory_space<vmem>>, vector<4x32x256xf32>
    tpu.vector_store %arg5[%c0_19, %c0_20, %c0_21], %37 {strides = array<i32>} : memref<4x32x256xf32, #tpu.memory_space<vmem>>, vector<4x32x256xf32>,
    return
  }
  func.func @transform_0(%arg0: i32) -> (i32, i32, i32) {
    %c0_i32 = arith.constant 0 : i32
    %c0_i32_0 = arith.constant 0 : i32
    %c0_i32_1 = arith.constant 0 : i32
    return %arg0, %c0_i32, %c0_i32_0 : i32, i32, i32
  }
  func.func @transform_1(%arg0: i32) -> (i32, i32) {
    %c0_i32 = arith.constant 0 : i32
    %c0_i32_0 = arith.constant 0 : i32
    %c0_i32_1 = arith.constant 0 : i32
    return %c0_i32, %c0_i32_0 : i32, i32
  }
  func.func @transform_2(%arg0: i32) -> (i32, i32) {
    %c0_i32 = arith.constant 0 : i32
    %c0_i32_0 = arith.constant 0 : i32
    %c0_i32_1 = arith.constant 0 : i32
    return %c0_i32, %c0_i32_0 : i32, i32
  }
  func.func @transform_3(%arg0: i32) -> (i32, i32) {
    %c0_i32 = arith.constant 0 : i32
    %c0_i32_0 = arith.constant 0 : i32
    %c0_i32_1 = arith.constant 0 : i32
    return %c0_i32, %c0_i32_0 : i32, i32
  }
  func.func @transform_4(%arg0: i32) -> (i32, i32, i32) {
    %c0_i32 = arith.constant 0 : i32
    %c0_i32_0 = arith.constant 0 : i32
    %c0_i32_1 = arith.constant 0 : i32
    return %arg0, %c0_i32, %c0_i32_0 : i32, i32, i32
  }
}

</mosaic_0001>

<bundles_post_ra>
// kernel: tpu_custom_call.1
= control target key start
LH: loop header
LB: loop body
LE: loop exit
PB: predicated region body
PF: predicated region fallthrough
CT: control target
= control target key end

     0   :  { %9 = vsyncpa [#allocation3], 0  ;;  %s2675_s0 = inlined_call_operand.hbm [shape: f32[8,32,256], index: 0, kind: input, shape index: {}]   ;;  %s2676_s1 = inlined_call_operand.vmem [shape: f32[32,2], index: 1, kind: input, shape index: {}]   ;;  %s2677_s2 = inlined_call_operand.vmem [shape: f32[2,32], index: 2, kind: input, shape index: {}]   ;;  %s2678_s3 = inlined_call_operand.hbm [shape: f32[512,256], index: 3, kind: input, shape index: {}]   ;;  %s2679_s4 = inlined_call_operand.hbm [shape: f32[8,32,256], index: 4, kind: output, shape index: {}]  }
   0x1   :  { %11 = vsyncpa [#allocation3 + $0x1], 0 }
   0x2   :  { %12 = vsyncpa [#allocation6], 0 }
   0x3   :  { %13 = vsyncpa [#allocation4], 0 }
   0x4   :  { %15 = vsyncpa [#allocation4 + $0x1], 0  ;;  %s2021_s15 = smov 0   ;;  %s2023_s16 = smov 0  }
   0x5   :  { %s2025_s17 = smov 0   ;;  %s2027_s18 = smov 0  }
   0x6 LB: > { %s2042_s19 = sadd.s32 4294967295, %s1983_s18   ;;  %s1559_s20 = sadd.s32 4294967294, %s1983_s18   ;;  %s1983_s18 = sphi %s2027_s18, %s2733_s18   ;;  %s1979_s17 = sphi %s2025_s17, %s2732_s17   ;;  %s1975_s16 = sphi %s2023_s16, %s2731_s16   ;;  %s1971_s15 = sphi %s2021_s15, %s2730_s15  }
   0x7   : > { %p41_p0 = scmp.ne.s32.totalorder %s1975_s16, %s1971_s15  ;;  %p2680_p1 = scmp.eq.s32.totalorder %s2042_s19, 0 }
   0x8   : > { %p134_p3 = scmp.eq.s32.totalorder %s1559_s20, 1  ;;  %p1560_p5 = scmp.ge.s32.totalorder %s1983_s18, 1 }
   0x9   : > { %p2051_p4 = por %p2680_p1, %p41_p0  ;;  %p141_p7 = scmp.lt.s32.totalorder %s1983_s18, 3 }
   0xa   : > { %p2056_p6 = por %p134_p3, %p41_p0  ;;  %s1985_s24 = smov [#allocation5]  }
   0xb   : > { %s2694_s21 = scalar_select %p2051_p4, 1, 0 }
   0xc   : > { %s2695_s22 = scalar_select %p2056_p6, 1, 0 }
   0xd   : > { %p2061_p8 = pnand %p1560_p5, %p141_p7  ;;  %s159_s25 = sshll.u32 %s1985_s24, 4  ;;  %s2065_s25 = int_to_ptr.vmem [resolvable:$true] %s159_s25 }
   0xe   : > { %s2077_s27 = sadd.s32 1, %s1983_s18   ;;  %s28_s28 = sadd.s32 1, %s1979_s17 }
   0xf   : > { %s2696_s23 = scalar_select %p2061_p8, 1, 0 }
  0x10   : > { %p1754_p9 = pneg %p2061_p8  ;;  %s25_s29 = ssub.s32 %s1983_s18, %s2077_s27 }
  0x11   : > { %s1855_s6 = scalar_lea.hbm %s2678_s3, 16384 }
  0x12   : > { %p2072_p11 = pnand %p1754_p9, %p2680_p1  ;;  %p1856_p12 = scmp.ne.s32.totalorder %s2678_s3, %s1855_s6 }
  0x13   : > { %p1862_p5 = scmp.lt.u32.totalorder %s1855_s6, %s2678_s3 }
  0x14   : > { %p1857_p13 = pneg %p2072_p11 }
  0x16   : > { %p1858_p0 = pnand %p1857_p13, %p1856_p12 }
  0x18   : > { %p1859_p3 = pneg %p1858_p0 }
  0x1a   : > { %p1864_p7 = pnand %p1862_p5, %p1859_p3 }
  0x1c   : > { %1867 = shalt.err (!%p1864_p7)
}
  0x1d   : > { %s1868_s11 = scalar_lea.vmem %s2065_s25, 16384  ;;  %p1876_p2 = scmp.lt.s32.totalorder %s2065_s25, %s2065_s25 }
  0x1e   : > { %p1869_p9 = scmp.ne.s32.totalorder %s2065_s25, %s1868_s11  ;;  %p1877_p6 = scmp.lt.s32.totalorder %s1868_s11, %s1868_s11 }
  0x20   : > { %p1871_p10 = pnand %p1869_p9, %p1857_p13  ;;  %p1878_p4 = por %p1877_p6, %p1876_p2 }
  0x22   : > { %p1872_p1 = pneg %p1871_p10 }
  0x24   : > { %p1879_p8 = pnand %p1878_p4, %p1872_p1 }
  0x26   : > { %1882 = shalt.err (!%p1879_p8)
}
  0x27   : > { %s1986_s12 = smov 256   ;;  %s1987_s13 = smov 16  }
  0x28   : > { %1757 = dma.hbm_to_vmem [thread:$0]  (!%p2072_p11), %s2678_s3, 16384, %s2065_s25, [#allocation6], %s1986_s12, %s1986_s12, %s1987_s13  }
  0x29   : > { %p26_p1 = scmp.eq.s32.totalorder %s25_s29, 0  ;;  %p35_p2 = scmp.ne.s32.totalorder %s1979_s17, %s1975_s16 }
  0x2a   : > { %p36_p4 = scmp.eq.s32.totalorder %s1983_s18, 0  ;;  %p1767_p6 = scmp.lt.s32.totalorder %s1983_s18, 2 }
  0x2b   : > { %s2111_s24 = scalar_select %p26_p1, %s1979_s17, %s28_s28  }
  0x2c   : > { %p37_p8 = por %p36_p4, %p35_p2  ;;  %p2698_p10 = scmp.eq.s32.totalorder %s2042_s19, 1 }
  0x2d   : > { %s173_s26 = sand.u32 1, %s1979_s17   ;;  %s1584_s5 = sshll.u32 %s1983_s18, 12 }
  0x2e   : > { %p2115_p12 = por %p2698_p10, %p35_p2  ;;  %s1563_s6 = sshll.u32 %s173_s26, 8 }
  0x2f   : > { %s2124_s9 = scalar_lea.hbm %s2675_s0, %s1584_s5  ;;  %s177_s25 = scalar_lea.vmem [#allocation2], %s1563_s6 }
  0x30   : > { %s185_s28 = sshll.u32 %s177_s25, 4  ;;  %p2126_p11 = pnand %p1767_p6, %p37_p8  ;;  %s2130_s28 = int_to_ptr.vmem [resolvable:$true] %s185_s28 }
  0x31   : > { %s2132_s10 = scalar_lea.sflag [#allocation3], %s173_s26  ;;  %s1883_s11 = scalar_lea.hbm %s2124_s9, 4096 }
  0x32   : > { %p1884_p13 = scmp.ne.s32.totalorder %s2124_s9, %s1883_s11  ;;  %p1885_p0 = pneg %p2126_p11 }
  0x33   : > { %s1888_s5 = scalar_lea.hbm %s2675_s0, 8192  ;;  %p1889_p7 = scmp.lt.u32.totalorder %s2124_s9, %s2675_s0 }
  0x34   : > { %p1886_p3 = pnand %p1885_p0, %p1884_p13  ;;  %p1890_p9 = scmp.lt.u32.totalorder %s1888_s5, %s1883_s11 }
  0x35   : > { %p1892_p2 = scmp.lt.u32.totalorder %s1883_s11, %s2124_s9 }
  0x36   : > { %p1887_p5 = pneg %p1886_p3  ;;  %p1891_p1 = por %p1890_p9, %p1889_p7 }
  0x38   : > { %p1893_p4 = por %p1892_p2, %p1891_p1 }
  0x3a   : > { %p1894_p6 = pnand %p1893_p4, %p1887_p5 }
  0x3c   : > { %1897 = shalt.err (!%p1894_p6)
}
  0x3d   : > { %s1898_s26 = scalar_lea.vmem %s2130_s28, 4096  ;;  %s1988_s8 = smov [#allocation2]  }
  0x3e   : > { %p1899_p8 = scmp.ne.s32.totalorder %s2130_s28, %s1898_s26  ;;  %s1903_s25 = sshll.u32 %s1988_s8, 4  ;;  %s1904_s25 = int_to_ptr.vmem [resolvable:$false] %s1903_s25 }
  0x3f   : > { %s1905_s14 = scalar_lea.vmem %s1904_s25, 8192  ;;  %p1906_p3 = scmp.lt.s32.totalorder %s2130_s28, %s1904_s25 }
  0x40   : > { %p1901_p10 = pnand %p1899_p8, %p1885_p0  ;;  %p1907_p7 = scmp.lt.s32.totalorder %s1905_s14, %s1898_s26 }
  0x42   : > { %p1902_p13 = pneg %p1901_p10  ;;  %p1908_p9 = por %p1907_p7, %p1906_p3 }
  0x44   : > { %p1909_p1 = pnand %p1908_p9, %p1902_p13 }
  0x46   : > { %1912 = shalt.err (!%p1909_p1)
}
  0x47   : > { %1761 = dma.hbm_to_vmem [thread:$0]  (!%p2126_p11), %s2124_s9, 4096, %s2130_s28, %s2132_s10, %s1986_s12, %s1986_s12, %s1987_s13  }
  0x48   : > { %p2701_p0 = scmp.ne.s32.totalorder %s2696_s23, 0 }
  0x4a   : > { %197 = sbr.rel (%p2701_p0) target bundleno = 1219 (0x4c3), region = 36 }
  0x51   : > { %s2166_s11 = sand.u32 1, %s1975_s16   ;;  %p2702_p5 = scmp.ne.s32.totalorder %s2694_s21, 0 }
  0x52   : > { %s1568_s20 = sshll.u32 %s2166_s11, 8  ;;  %s200_s5 = scalar_lea.sflag [#allocation3], %s2166_s11 }
  0x53   : > { %s2172_s29 = scalar_lea.vmem [#allocation2], %s1568_s20 }
  0x54   : > { %1958 = dma.done.wait (%p2702_p5), %s200_s5, 4096  }
  0x55   : > { %1960 = vsyncadd (%p2702_p5), %s200_s5, 4294963200  ;;  %p2703_p11 = scmp.eq.s32.totalorder %s2042_s19, 0 }
  0x57   : > { %1962 = dma.done.wait (%p2703_p11), [#allocation6], 16384   ;;  %p2704_p2 = pmov %p2703_p11 }
  0x58   : > { %v242_v0 = vld [vmem:[%s2172_s29 + $0x40] sm:$0xff]  ;;  %v243_v1 = vld [vmem:[%s2172_s29 + $0x48] sm:$0xff]  ;;  %v244_v5 = vld [vmem:[%s2172_s29 + $0x50] sm:$0xff]  ;;  %vm1990_vm0 = vmmov 0   ;;  %vm406_vm1 = vcmask 130112   ;;  %vm413_vm2 = vcmask 195712  }
  0x59   : > { %1964 = vsyncadd (%p2704_p2), [#allocation6], 4294950912  ;;  %v234_v2 = vld [vmem:[%s2172_s29] sm:$0xff]  ;;  %v278_v3 = vadd.f32 %v243_v1, %v242_v0  ;;  %v235_v4 = vld [vmem:[%s2172_s29 + $0x8] sm:$0xff]  ;;  %v343_v40 = vmax.f32 %v242_v0, %v243_v1  ;;  %vm420_vm3 = vcmask 261312   ;;  %vm479_vm4 = vcmask 1041409  }
  0x5a   : > { %v245_v6 = vld [vmem:[%s2172_s29 + $0x58] sm:$0xff]  ;;  %v266_v7 = vadd.f32 %v235_v4, %v234_v2  ;;  %v236_v8 = vld [vmem:[%s2172_s29 + $0x10] sm:$0xff]  ;;  %v246_v12 = vld [vmem:[%s2172_s29 + $0x60] sm:$0xff]  ;;  %v331_v38 = vmax.f32 %v234_v2, %v235_v4  ;;  %vm578_vm5 = vcmask 1045509   ;;  %vm580_vm6 = vcmask 1046534   ;;  %s2567_s8 = scalar_lea.vmem [#allocation7], %s1568_s20 }
  0x5b   : > { %v237_v9 = vld [vmem:[%s2172_s29 + $0x18] sm:$0xff]  ;;  %279 = vadd.xlane.f32.xlu1 %v278_v3  ;;  %v281_v10 = vadd.f32 %v245_v6, %v244_v5  ;;  %v247_v13 = vld [vmem:[%s2172_s29 + $0x68] sm:$0xff]  ;;  %v238_v14 = vld [vmem:[%s2172_s29 + $0x20] sm:$0xff]  ;;  %v346_v45 = vmax.f32 %v244_v5, %v245_v6  ;;  %v1989_v3 = vmov 0.0|0.0   ;;  %vm481_vm7 = vcmask 1042434   ;;  %s1586_s25 = sshll.u32 %s2042_s19, 12 }
  0x5c   : > { %267 = vadd.xlane.f32.xlu0 %v266_v7  ;;  %v269_v11 = vadd.f32 %v237_v9, %v236_v8  ;;  %v239_v15 = vld [vmem:[%s2172_s29 + $0x28] sm:$0xff]  ;;  %v284_v16 = vadd.f32 %v247_v13, %v246_v12  ;;  %v252_v18 = vld [vmem:[%s2172_s29 + $0x90] sm:$0xff]  ;;  %v253_v19 = vld [vmem:[%s2172_s29 + $0x98] sm:$0xff]  ;;  %v334_v41 = vmax.f32 %v236_v8, %v237_v9  ;;  %v349_v51 = vmax.f32 %v246_v12, %v247_v13  ;;  %s1476_s14 = sshll.u32 %s2567_s8, 4  ;;  %s2615_s5 = scalar_lea.hbm %s2679_s4, %s1586_s25  ;;  %s2617_s14 = int_to_ptr.vmem [resolvable:$true] %s1476_s14 }
  0x5d   : > { %v272_v17 = vadd.f32 %v239_v15, %v238_v14  ;;  %v250_v20 = vld [vmem:[%s2172_s29 + $0x80] sm:$0xff]  ;;  %v251_v21 = vld [vmem:[%s2172_s29 + $0x88] sm:$0xff]  ;;  %v293_v22 = vadd.f32 %v253_v19, %v252_v18  ;;  %v248_v24 = vld [vmem:[%s2172_s29 + $0x70] sm:$0xff]  ;;  %v337_v48 = vmax.f32 %v238_v14, %v239_v15  ;;  %v358_v55 = vmax.f32 %v252_v18, %v253_v19  ;;  %1610 = vmatprep.subr.bf16.mxu0 %v1989_v3  ;;  %s1913_s21 = scalar_lea.vmem %s2617_s14, 4096  ;;  %s1993_s23 = smov [#allocation7]  }
  0x5e   : > { %v290_v23 = vadd.f32 %v251_v21, %v250_v20  ;;  %v249_v25 = vld [vmem:[%s2172_s29 + $0x78] sm:$0xff]  ;;  %v240_v26 = vld [vmem:[%s2172_s29 + $0x30] sm:$0xff]  ;;  %v258_v30 = vld [vmem:[%s2172_s29 + $0xc0] sm:$0xff]  ;;  %v355_v50 = vmax.f32 %v250_v20, %v251_v21  ;;  %v1991_v7 = vmov 0.0   ;;  %vm483_vm8 = vcmask 1043459   ;;  %p1914_p4 = scmp.ne.s32.totalorder %s2617_s14, %s1913_s21  ;;  %s1917_s12 = sshll.u32 %s1993_s23, 4  ;;  %s1918_s12 = int_to_ptr.vmem [resolvable:$false] %s1917_s12 }
  0x5f   : > { %282 = vadd.xlane.f32.xlu1 %v281_v10  ;;  %v241_v27 = vld [vmem:[%s2172_s29 + $0x38] sm:$0xff]  ;;  %v287_v28 = vadd.f32 %v249_v25, %v248_v24  ;;  %v259_v31 = vld [vmem:[%s2172_s29 + $0xc8] sm:$0xff]  ;;  %v254_v32 = vld [vmem:[%s2172_s29 + $0xa0] sm:$0xff]  ;;  %v352_v56 = vmax.f32 %v248_v24, %v249_v25  ;;  %1602 = vmatprep.mubr.msk.f32.mxu0 %vm1990_vm0, %v1991_v7  ;;  %v395_v24 = vlaneseq  ;;  %vm582_vm9 = vcmask 1047559   ;;  %s1919_s13 = scalar_lea.vmem %s1918_s12, 8192  ;;  %p1920_p10 = scmp.lt.s32.totalorder %s2617_s14, %s1918_s12 }
  0x60   : > { %270 = vadd.xlane.f32.xlu0 %v269_v11  ;;  %v275_v29 = vadd.f32 %v241_v27, %v240_v26  ;;  %v255_v33 = vld [vmem:[%s2172_s29 + $0xa8] sm:$0xff]  ;;  %v302_v34 = vadd.f32 %v259_v31, %v258_v30  ;;  %v260_v36 = vld [vmem:[%s2172_s29 + $0xd0] sm:$0xff]  ;;  %v261_v37 = vld [vmem:[%s2172_s29 + $0xd8] sm:$0xff]  ;;  %v340_v57 = vmax.f32 %v240_v26, %v241_v27  ;;  %v367_v58 = vmax.f32 %v258_v30, %v259_v31  ;;  %p1915_p6 = pnand %p1914_p4, %p2115_p12  ;;  %p1921_p13 = scmp.lt.s32.totalorder %s1919_s13, %s1913_s21 }
  0x61   : > { %v296_v35 = vadd.f32 %v255_v33, %v254_v32  ;;  %v305_v39 = vadd.f32 %v261_v37, %v260_v36  ;;  %v256_v42 = vld [vmem:[%s2172_s29 + $0xb0] sm:$0xff]  ;;  %v257_v43 = vld [vmem:[%s2172_s29 + $0xb8] sm:$0xff]  ;;  %v262_v46 = vld [vmem:[%s2172_s29 + $0xe0] sm:$0xff]  ;;  %v361_v59 = vmax.f32 %v254_v32, %v255_v33  ;;  %v370_v61 = vmax.f32 %v260_v36, %v261_v37  ;;  %1605 = vmatprep.subr.mxu1 %v1991_v7 }
  0x62   : > { %v299_v44 = vadd.f32 %v257_v43, %v256_v42  ;;  %v263_v47 = vld [vmem:[%s2172_s29 + $0xe8] sm:$0xff]  ;;  %v264_v52 = vld [vmem:[%s2172_s29 + $0xf0] sm:$0xff]  ;;  %v265_v53 = vld [vmem:[%s2172_s29 + $0xf8] sm:$0xff]  ;;  %v364_v60 = vmax.f32 %v256_v42, %v257_v43  ;;  %1607 = vmatprep.mubr.msk.f32.mxu1 %vm1990_vm0, %v1991_v7  ;;  %v396_v27 = vand.u32 127, %v395_v24  ;;  %v2236_v30 = vshrl.u32 %v395_v24, 7  ;;  %p1916_p8 = pneg %p1915_p6  ;;  %p1922_p3 = por %p1921_p13, %p1920_p10 }
  0x63   : > { %285 = vadd.xlane.f32.xlu1 %v284_v16  ;;  %v308_v49 = vadd.f32 %v263_v47, %v262_v46  ;;  %v311_v54 = vadd.f32 %v265_v53, %v264_v52  ;;  %v376_v62 = vmax.f32 %v264_v52, %v265_v53  ;;  %v373_v63 = vmax.f32 %v262_v46, %v263_v47  ;;  %v587_v0 = vld [vmem:[%s2676_s1] sm:$0xff]  ;;  %v588_v1 = vld [vmem:[%s2676_s1 + $0x8] sm:$0xff]  ;;  %v589_v4 = vld [vmem:[%s2676_s1 + $0x10] sm:$0xff] }
  0x64   : > { %273 = vadd.xlane.f32.xlu0 %v272_v17  ;;  %v1611_v2 = vpack.c.bf16 %v588_v1, %v587_v0  ;;  %v590_v5 = vld [vmem:[%s2676_s1 + $0x18] sm:$0xff]  ;;  %v401_v31 = vadd.s32 4294967288, %v396_v27  ;;  %v408_v32 = vadd.s32 4294967280, %v396_v27  ;;  %v2243_v36 = vsub.s32 %v396_v27, %v2236_v30  ;;  %p1923_p7 = pnand %p1922_p3, %p1916_p8 }
  0x65   : > { %v1614_v6 = vpack.c.bf16 %v590_v5, %v589_v4  ;;  %vm585_vm10 = vcmask 1043456   ;;  %vm591_vm11 = vcmask 261120   ;;  %vm671_vm12 = vcmask 1041408  }
  0x66   : > { %1612 = vmatpush3.bf16.msra.mxu0 %v1611_v2  ;;  %v2246_v37 = vsub.s32 %v401_v31, %v2236_v30  ;;  %vm667_vm13 = vcmask 15360  }
  0x67   : > { %294 = vadd.xlane.f32.xlu1 %v293_v22  ;;  %1613 = vmatprep.subr.bf16.mxu0 %v1989_v3 }
  0x68   : > { %291 = vadd.xlane.f32.xlu0 %v290_v23 }
  0x6a   : > { %1615 = vmatpush3.bf16.msra.mxu0 %v1614_v6 }
  0x6b   : > { %288 = vadd.xlane.f32.xlu1 %v287_v28 }
  0x6c   : > { %276 = vadd.xlane.f32.xlu0 %v275_v29 }
  0x6f   : > { %303 = vadd.xlane.f32.xlu1 %v302_v34  ;;  %v415_v34 = vadd.s32 4294967272, %v396_v27 }
  0x70   : > { %297 = vadd.xlane.f32.xlu0 %v296_v35 }
  0x73   : > { %332 = vmax.xlane.f32.xlu1 %v331_v38 }
  0x74   : > { %306 = vadd.xlane.f32.xlu0 %v305_v39 }
  0x77   : > { %344 = vmax.xlane.f32.xlu1 %v343_v40 }
  0x78   : > { %335 = vmax.xlane.f32.xlu0 %v334_v41  ;;  %v2249_v41 = vsub.s32 %v408_v32, %v2236_v30 }
  0x7b   : > { %300 = vadd.xlane.f32.xlu1 %v299_v44 }
  0x7c   : > { %347 = vmax.xlane.f32.xlu0 %v346_v45 }
  0x7f   : > { %338 = vmax.xlane.f32.xlu1 %v337_v48  ;;  %v2252_v48 = vsub.s32 %v415_v34, %v2236_v30 }
  0x80   : > { %309 = vadd.xlane.f32.xlu0 %v308_v49 }
  0x83   : > { %356 = vmax.xlane.f32.xlu1 %v355_v50 }
  0x84   : > { %350 = vmax.xlane.f32.xlu0 %v349_v51 }
  0x87   : > { %312 = vadd.xlane.f32.xlu1 %v311_v54 }
  0x88   : > { %359 = vmax.xlane.f32.xlu0 %v358_v55 }
  0x8b   : > { %353 = vmax.xlane.f32.xlu1 %v352_v56 }
  0x8c   : > { %341 = vmax.xlane.f32.xlu0 %v340_v57 }
  0x8f   : > { %368 = vmax.xlane.f32.xlu1 %v367_v58 }
  0x90   : > { %362 = vmax.xlane.f32.xlu0 %v361_v59 }
  0x93   : > { %365 = vmax.xlane.f32.xlu1 %v364_v60 }
  0x94   : > { %371 = vmax.xlane.f32.xlu0 %v370_v61 }
  0x97   : > { %377 = vmax.xlane.f32.xlu1 %v376_v62 }
  0x98   : > { %374 = vmax.xlane.f32.xlu0 %v373_v63 }
  0xe8   : > { %v280_v8 = vpop.xlane.xlu1 %279 }
  0xe9   : > { %v268_v9 = vpop.xlane.xlu0 %267  ;;  %v319_v38 = vmul.f32 0.00390625, %v280_v8 }
  0xea   : > { %v315_v47 = vmul.f32 0.00390625, %v268_v9 }
  0xeb   : > { %v425_v52 = vrot.slane %v319_v38, %v2243_v36 }
  0xec   : > { %v283_v10 = vpop.xlane.xlu1 %282  ;;  %v400_v60 = vrot.slane %v315_v47, %v2243_v36 }
  0xed   : > { %v271_v11 = vpop.xlane.xlu0 %270  ;;  %v320_v39 = vmul.f32 0.00390625, %v283_v10 }
  0xee   : > { %v316_v40 = vmul.f32 0.00390625, %v271_v11 }
  0xef   : > { %v429_v53 = vrot.slane %v320_v39, %v2246_v37 }
  0xf0   : > { %v286_v12 = vpop.xlane.xlu1 %285  ;;  %v405_v54 = vrot.slane %v316_v40, %v2246_v37 }
  0xf1   : > { %v274_v13 = vpop.xlane.xlu0 %273  ;;  %v321_v42 = vmul.f32 0.00390625, %v286_v12  ;;  %v430_v2 = vsel %vm406_vm1, %v429_v53, %v425_v52 }
  0xf2   : > { %v317_v43 = vmul.f32 0.00390625, %v274_v13  ;;  %v407_v3 = vsel %vm406_vm1, %v405_v54, %v400_v60 }
  0xf3   : > { %v434_v55 = vrot.slane %v321_v42, %v2249_v41 }
  0xf4   : > { %v295_v14 = vpop.xlane.xlu1 %294  ;;  %v412_v56 = vrot.slane %v317_v43, %v2249_v41 }
  0xf5   : > { %v292_v15 = vpop.xlane.xlu0 %291  ;;  %v324_v44 = vmul.f32 0.00390625, %v295_v14  ;;  %v435_v5 = vsel %vm413_vm2, %v434_v55, %v430_v2  ;;  %v666_v2 = vld [vmem:[%s2677_s2] sm:$0x3] }
  0xf6   : > { %v323_v45 = vmul.f32 0.00390625, %v292_v15  ;;  %v414_v6 = vsel %vm413_vm2, %v412_v56, %v407_v3  ;;  %1606 = vmatpush3.msk.msra.mxu1 %vm671_vm12, %v666_v2  ;;  %v1130_v2 = vld [vmem:[#allocation5 + $0x290] sm:$0xff] }
  0xf7   : > { %v448_v57 = vrot.slane %v324_v44, %v2246_v37 }
  0xf8   : > { %v289_v16 = vpop.xlane.xlu1 %288  ;;  %v444_v58 = vrot.slane %v323_v45, %v2243_v36 }
  0xf9   : > { %v277_v17 = vpop.xlane.xlu0 %276  ;;  %v322_v49 = vmul.f32 0.00390625, %v289_v16 }
  0xfa   : > { %v318_v50 = vmul.f32 0.00390625, %v277_v17  ;;  %v449_v7 = vsel %vm406_vm1, %v448_v57, %v444_v58 }
  0xfb   : > { %v439_v61 = vrot.slane %v322_v49, %v2252_v48 }
  0xfc   : > { %v304_v18 = vpop.xlane.xlu1 %303  ;;  %v419_v62 = vrot.slane %v318_v50, %v2252_v48 }
  0xfd   : > { %v298_v19 = vpop.xlane.xlu0 %297  ;;  %v327_v1 = vmul.f32 0.00390625, %v304_v18  ;;  %v440_v9 = vsel %vm420_vm3, %v439_v61, %v435_v5 }
  0xfe   : > { %v325_v63 = vmul.f32 0.00390625, %v298_v19  ;;  %v421_v10 = vsel %vm420_vm3, %v419_v62, %v414_v6  ;;  %v1113_v6 = vld [vmem:[#allocation5 + $0x208] sm:$0xff] }
  0xff   : > { %v463_v14 = vrot.slane %v327_v1, %v2243_v36 }
 0x100   : > { %v2226_v20 = vpop.xlane.xlu1 %332  ;;  %v453_v11 = vrot.slane %v325_v63, %v2249_v41 }
 0x101   : > { %v307_v21 = vpop.xlane.xlu0 %306  ;;  %v505_v15 = vrot.slane %v2226_v20, %v2243_v36 }
 0x102   : > { %v328_v4 = vmul.f32 0.00390625, %v307_v21  ;;  %v454_v31 = vsel %vm413_vm2, %v453_v11, %v449_v7  ;;  %v1115_v7 = vld [vmem:[#allocation5 + $0x218] sm:$0xff]  ;;  %v1049_v11 = vld [vmem:[#allocation5 + $0x8] sm:$0xff] }
 0x104   : > { %v2228_v22 = vpop.xlane.xlu1 %344  ;;  %v467_v18 = vrot.slane %v328_v4, %v2246_v37 }
 0x105   : > { %v2230_v23 = vpop.xlane.xlu0 %335 }
 0x106   : > { %v509_v19 = vrot.slane %v2230_v23, %v2246_v37  ;;  %v468_v45 = vsel %vm406_vm1, %v467_v18, %v463_v14 }
 0x108   : > { %v301_v25 = vpop.xlane.xlu1 %300  ;;  %v510_v40 = vsel %vm406_vm1, %v509_v19, %v505_v15  ;;  %v1048_v15 = vld [vmem:[#allocation5] sm:$0xff]  ;;  %v1119_v19 = vld [vmem:[#allocation5 + $0x238] sm:$0xff] }
 0x109   : > { %v2232_v26 = vpop.xlane.xlu0 %347  ;;  %v326_v12 = vmul.f32 0.00390625, %v301_v25  ;;  %v524_v25 = vrot.slane %v2228_v22, %v2243_v36 }
 0x10a   : > { %v528_v16 = vrot.slane %v2232_v26, %v2246_v37 }
 0x10b   : > { %v458_v23 = vrot.slane %v326_v12, %v2252_v48  ;;  %v1051_v12 = vld [vmem:[#allocation5 + $0x18] sm:$0xff] }
 0x10c   : > { %v2234_v28 = vpop.xlane.xlu1 %338  ;;  %v529_v22 = vsel %vm406_vm1, %v528_v16, %v524_v25  ;;  %v1616_v14 = vpack.c.bf16 %v1051_v12, %v1049_v11  ;;  %v1050_v16 = vld [vmem:[#allocation5 + $0x10] sm:$0xff]  ;;  %v1135_v11 = vld [vmem:[#allocation5 + $0x2b8] sm:$0xff] }
 0x10d   : > { %v310_v29 = vpop.xlane.xlu0 %309  ;;  %v514_v20 = vrot.slane %v2234_v28, %v2249_v41  ;;  %v1618_v18 = vpack.c.bf16 %v1050_v16, %v1048_v15  ;;  %v1069_v16 = vld [vmem:[#allocation5 + $0xa8] sm:$0xff] }
 0x10e   : > { %v329_v17 = vmul.f32 0.00390625, %v310_v29  ;;  %1617 = vmatprep.subr.bf16.mxu0 %v1616_v14  ;;  %v1134_v14 = vld [vmem:[#allocation5 + $0x2b0] sm:$0xff] }
 0x110   : > { %v2238_v33 = vpop.xlane.xlu1 %356  ;;  %v472_v38 = vrot.slane %v329_v17, %v2249_v41  ;;  %v1117_v17 = vld [vmem:[#allocation5 + $0x228] sm:$0xff] }
 0x111   : > { %v2240_v35 = vpop.xlane.xlu0 %350  ;;  %v543_v28 = vrot.slane %v2238_v33, %v2243_v36  ;;  %v1684_v25 = vpack.c.bf16 %v1119_v19, %v1117_v17  ;;  %v1071_v17 = vld [vmem:[#allocation5 + $0xb8] sm:$0xff] }
 0x112   : > { %v533_v21 = vrot.slane %v2240_v35, %v2249_v41  ;;  %v473_v55 = vsel %vm413_vm2, %v472_v38, %v468_v45  ;;  %v1120_v38 = vld [vmem:[#allocation5 + $0x240] sm:$0xff]  ;;  %v1636_v19 = vpack.c.bf16 %v1071_v17, %v1069_v16  ;;  %v1153_v16 = vld [vmem:[#allocation5 + $0x348] sm:$0xff]  ;;  %v1155_v17 = vld [vmem:[#allocation5 + $0x358] sm:$0xff] }
 0x114   : > { %v313_v46 = vpop.xlane.xlu1 %312  ;;  %v534_v42 = vsel %vm413_vm2, %v533_v21, %v529_v22  ;;  %v1116_v21 = vld [vmem:[#allocation5 + $0x220] sm:$0xff] }
 0x115   : > { %v2254_v51 = vpop.xlane.xlu0 %359  ;;  %v330_v24 = vmul.f32 0.00390625, %v313_v46  ;;  %v515_v46 = vsel %vm413_vm2, %v514_v20, %v510_v40  ;;  %v1059_v40 = vld [vmem:[#allocation5 + $0x58] sm:$0xff] }
 0x116   : > { %v547_v26 = vrot.slane %v2254_v51, %v2246_v37 }
 0x117   : > { %v477_v43 = vrot.slane %v330_v24, %v2252_v48  ;;  %v1118_v24 = vld [vmem:[#allocation5 + $0x230] sm:$0xff] }
 0x118   : > { %v354_v59 = vpop.xlane.xlu1 %353  ;;  %v548_v47 = vsel %vm406_vm1, %v547_v26, %v543_v28  ;;  %v1686_v20 = vpack.c.bf16 %v1118_v24, %v1116_v21  ;;  %v1053_v26 = vld [vmem:[#allocation5 + $0x28] sm:$0xff]  ;;  %v1122_v28 = vld [vmem:[#allocation5 + $0x250] sm:$0xff]  ;;  %v1068_v21 = vld [vmem:[#allocation5 + $0xa0] sm:$0xff] }
 0x119   : > { %v342_v0 = vpop.xlane.xlu0 %341  ;;  %v538_v27 = vrot.slane %v354_v59, %v2252_v48  ;;  %v478_v58 = vsel %vm420_vm3, %v477_v43, %v473_v55  ;;  %v1058_v43 = vld [vmem:[#allocation5 + $0x50] sm:$0xff] }
 0x11a   : > { %v519_v32 = vrot.slane %v342_v0, %v2252_v48  ;;  %v1070_v24 = vld [vmem:[#allocation5 + $0xb0] sm:$0xff] }
 0x11b   : > { %v539_v49 = vsel %vm420_vm3, %v538_v27, %v534_v42  ;;  %v1055_v27 = vld [vmem:[#allocation5 + $0x38] sm:$0xff]  ;;  %v1056_v42 = vld [vmem:[#allocation5 + $0x40] sm:$0xff] }
 0x11c   : > { %v369_v8 = vpop.xlane.xlu1 %368  ;;  %v520_v33 = vsel %vm420_vm3, %v519_v32, %v515_v46  ;;  %v1121_v32 = vld [vmem:[#allocation5 + $0x248] sm:$0xff] }
 0x11d   : > { %v363_v13 = vpop.xlane.xlu0 %362  ;;  %v562_v51 = vrot.slane %v369_v8, %v2243_v36  ;;  %v480_v36 = vsel %vm479_vm4, %v440_v9, %v421_v10  ;;  %v579_v60 = vsel %vm578_vm5, %v539_v49, %v520_v33  ;;  %v1112_v8 = vld [vmem:[#allocation5 + $0x200] sm:$0xff]  ;;  %v1680_v9 = vpack.c.bf16 %v1115_v7, %v1113_v6  ;;  %v1114_v10 = vld [vmem:[#allocation5 + $0x210] sm:$0xff]  ;;  %v1125_v46 = vld [vmem:[#allocation5 + $0x268] sm:$0xff] }
 0x11e   : > { %v552_v34 = vrot.slane %v363_v13, %v2249_v41  ;;  %v1682_v13 = vpack.c.bf16 %v1114_v10, %v1112_v8  ;;  %v1626_v49 = vpack.c.bf16 %v1058_v43, %v1056_v42  ;;  %v1124_v33 = vld [vmem:[#allocation5 + $0x260] sm:$0xff]  ;;  %v1066_v8 = vld [vmem:[#allocation5 + $0x90] sm:$0xff]  ;;  %v1133_v10 = vld [vmem:[#allocation5 + $0x2a8] sm:$0xff] }
 0x11f   : > { %1681 = vmatprep.subr.bf16.mxu1 %v1680_v9  ;;  %v1064_v7 = vld [vmem:[#allocation5 + $0x80] sm:$0xff]  ;;  %v1700_v12 = vpack.c.bf16 %v1135_v11, %v1133_v10  ;;  %v1085_v10 = vld [vmem:[#allocation5 + $0x128] sm:$0xff]  ;;  %v1087_v11 = vld [vmem:[#allocation5 + $0x138] sm:$0xff] }
 0x120   : > { %v366_v29 = vpop.xlane.xlu1 %365  ;;  %v553_v52 = vsel %vm413_vm2, %v552_v34, %v548_v47  ;;  %v1123_v34 = vld [vmem:[#allocation5 + $0x258] sm:$0xff]  ;;  %v1634_v9 = vpack.c.bf16 %v1066_v8, %v1064_v7  ;;  %v1150_v7 = vld [vmem:[#allocation5 + $0x330] sm:$0xff] }
 0x121   : > { %v372_v35 = vpop.xlane.xlu0 %371  ;;  %v557_v39 = vrot.slane %v366_v29, %v2252_v48  ;;  %v1052_v29 = vld [vmem:[#allocation5 + $0x20] sm:$0xff]  ;;  %v1688_v22 = vpack.c.bf16 %v1123_v34, %v1121_v32  ;;  %v1127_v47 = vld [vmem:[#allocation5 + $0x278] sm:$0xff]  ;;  %v1073_v34 = vld [vmem:[#allocation5 + $0xc8] sm:$0xff] }
 0x122   : > { %v566_v44 = vrot.slane %v372_v35, %v2246_v37  ;;  %v459_v37 = vsel %vm420_vm3, %v458_v23, %v454_v31  ;;  %v1620_v31 = vpack.c.bf16 %v1055_v27, %v1053_v26  ;;  %v1054_v23 = vld [vmem:[#allocation5 + $0x30] sm:$0xff]  ;;  %v1139_v26 = vld [vmem:[#allocation5 + $0x2d8] sm:$0xff] }
 0x123   : > { %v558_v56 = vsel %vm420_vm3, %v557_v39, %v553_v52  ;;  %v482_v63 = vsel %vm481_vm7, %v459_v37, %v480_v36  ;;  %v1622_v35 = vpack.c.bf16 %v1054_v23, %v1052_v29  ;;  %v1057_v39 = vld [vmem:[#allocation5 + $0x48] sm:$0xff]  ;;  %v1136_v29 = vld [vmem:[#allocation5 + $0x2c0] sm:$0xff] }
 0x124   : > { %v378_v50 = vpop.xlane.xlu1 %377  ;;  %v567_v59 = vsel %vm406_vm1, %v566_v44, %v562_v51  ;;  %v581_v61 = vsel %vm580_vm6, %v558_v56, %v579_v60  ;;  %v1690_v44 = vpack.c.bf16 %v1122_v28, %v1120_v38  ;;  %v1624_v45 = vpack.c.bf16 %v1059_v40, %v1057_v39  ;;  %v1126_v51 = vld [vmem:[#allocation5 + $0x270] sm:$0xff]  ;;  %v1072_v39 = vld [vmem:[#allocation5 + $0xc0] sm:$0xff] }
 0x125   : > { %v375_v53 = vpop.xlane.xlu0 %374  ;;  %v576_v54 = vrot.slane %v378_v50, %v2252_v48  ;;  %v1692_v50 = vpack.c.bf16 %v1127_v47, %v1125_v46  ;;  %v1694_v52 = vpack.c.bf16 %v1126_v51, %v1124_v33  ;;  %v2335_v38 = vsub.s32 1, %v2236_v30  ;;  %v1074_v40 = vld [vmem:[#allocation5 + $0xd0] sm:$0xff]  ;;  %v1140_v47 = vld [vmem:[#allocation5 + $0x2e0] sm:$0xff]  ;;  %v1077_v33 = vld [vmem:[#allocation5 + $0xe8] sm:$0xff] }
 0x126   : > { %v571_v57 = vrot.slane %v375_v53, %v2249_v41  ;;  %v484_v41 = vsel %vm483_vm8, %v478_v58, %v482_v63  ;;  %v1061_v58 = vld [vmem:[#allocation5 + $0x68] sm:$0xff]  ;;  %v795_v28 = vsub.s32 2, %v2236_v30  ;;  %v1642_v43 = vpack.c.bf16 %v1074_v40, %v1072_v39  ;;  %v1079_v51 = vld [vmem:[#allocation5 + $0xf8] sm:$0xff]  ;;  %v1158_v39 = vld [vmem:[#allocation5 + $0x370] sm:$0xff] }
 0x127   : > { %v1129_v63 = vld [vmem:[#allocation5 + $0x288] sm:$0xff] }
 0x128   : > { %v572_v48 = vsel %vm413_vm2, %v571_v57, %v567_v59  ;;  %v1063_v59 = vld [vmem:[#allocation5 + $0x78] sm:$0xff] }
 0x129   : > { %v577_v62 = vsel %vm420_vm3, %v576_v54, %v572_v48  ;;  %v1628_v60 = vpack.c.bf16 %v1063_v59, %v1061_v58  ;;  %v1060_v48 = vld [vmem:[#allocation5 + $0x60] sm:$0xff]  ;;  %v1147_v58 = vld [vmem:[#allocation5 + $0x318] sm:$0xff] }
 0x12a   : > { %v583_v0 = vsel %vm582_vm9, %v577_v62, %v581_v61  ;;  %v1062_v61 = vld [vmem:[#allocation5 + $0x70] sm:$0xff] }
 0x12b   : > { %v586_v1 = vsel %vm585_vm10, %v484_v41, %v583_v0  ;;  %v1630_v62 = vpack.c.bf16 %v1062_v61, %v1060_v48  ;;  %v1131_v41 = vld [vmem:[#allocation5 + $0x298] sm:$0xff]  ;;  %v1081_v61 = vld [vmem:[#allocation5 + $0x108] sm:$0xff] }
 0x12c   : > { %1603 = vmatmul.mubr.msk.f32.vlgmr.msra.gmra.mrb[0].mxu0 %vm591_vm11, %v586_v1  ;;  %v1696_v0 = vpack.c.bf16 %v1131_v41, %v1129_v63  ;;  %v1128_v1 = vld [vmem:[#allocation5 + $0x280] sm:$0xff]  ;;  %v814_v63 = vsub.s32 3, %v2236_v30 }
 0x12d   : > { %1619 = vmatpush1.bf16.msra.mxu0 %v1618_v18  ;;  %v2329_v18 = vsub.s32 0, %v2236_v30 }
 0x12e   : > { %1621 = vmatprep.subr.bf16.mxu0 %v1620_v31  ;;  %v1138_v31 = vld [vmem:[#allocation5 + $0x2d0] sm:$0xff] }
 0x12f   : > { %v1706_v32 = vpack.c.bf16 %v1138_v31, %v1136_v29  ;;  %v1088_v29 = vld [vmem:[#allocation5 + $0x140] sm:$0xff]  ;;  %v1090_v31 = vld [vmem:[#allocation5 + $0x150] sm:$0xff] }
 0x131   : > { %1623 = vmatpush1.bf16.msra.mxu0 %v1622_v35  ;;  %v1075_v35 = vld [vmem:[#allocation5 + $0xd8] sm:$0xff] }
 0x132   : > { %1625 = vmatprep.subr.bf16.mxu0 %v1624_v45  ;;  %v1640_v42 = vpack.c.bf16 %v1075_v35, %v1073_v34  ;;  %v1143_v45 = vld [vmem:[#allocation5 + $0x2f8] sm:$0xff] }
 0x133   : > { %v1159_v34 = vld [vmem:[#allocation5 + $0x378] sm:$0xff] }
 0x135   : > { %1627 = vmatpush1.bf16.msra.mxu0 %v1626_v49  ;;  %v1142_v49 = vld [vmem:[#allocation5 + $0x2f0] sm:$0xff] }
 0x136   : > { %1629 = vmatprep.subr.bf16.mxu0 %v1628_v60  ;;  %v1146_v60 = vld [vmem:[#allocation5 + $0x310] sm:$0xff] }
 0x139   : > { %1631 = vmatpush1.bf16.msra.mxu0 %v1630_v62  ;;  %v1083_v62 = vld [vmem:[#allocation5 + $0x118] sm:$0xff] }
 0x13a   : > { %v1648_v41 = vpack.c.bf16 %v1083_v62, %v1081_v61  ;;  %v1101_v62 = vld [vmem:[#allocation5 + $0x1a8] sm:$0xff] }
 0x1ff   : > { %v661_v3 = vpop.f32.mrb[0].mxu0 }
 0x200   : > { %v665_v4 = vmax.f32 %v661_v3, 0.0  ;;  %v1604_v5 = vpop.f32.mrb[1].mxu0  ;;  %v1698_v3 = vpack.c.bf16 %v1130_v2, %v1128_v1  ;;  %v1082_v1 = vld [vmem:[#allocation5 + $0x110] sm:$0xff] }
 0x201   : > { %v1067_v5 = vld [vmem:[#allocation5 + $0x98] sm:$0xff] }
 0x202   : > { %1608 = vmatmul.mubr.msk.f32.vlgmr.msra.gmra.mrb[0].mxu1 %vm667_vm13, %v665_v4  ;;  %v1065_v4 = vld [vmem:[#allocation5 + $0x88] sm:$0xff] }
 0x203   : > { %1683 = vmatpush1.bf16.msra.mxu1 %v1682_v13  ;;  %v1632_v6 = vpack.c.bf16 %v1067_v5, %v1065_v4  ;;  %v1132_v13 = vld [vmem:[#allocation5 + $0x2a0] sm:$0xff]  ;;  %v1151_v4 = vld [vmem:[#allocation5 + $0x338] sm:$0xff] }
 0x204   : > { %1685 = vmatprep.subr.bf16.mxu1 %v1684_v25  ;;  %v1702_v15 = vpack.c.bf16 %v1134_v14, %v1132_v13  ;;  %v1638_v25 = vpack.c.bf16 %v1070_v24, %v1068_v21  ;;  %v1084_v13 = vld [vmem:[#allocation5 + $0x120] sm:$0xff]  ;;  %v1086_v14 = vld [vmem:[#allocation5 + $0x130] sm:$0xff] }
 0x205   : > { %1633 = vmatprep.subr.bf16.mxu0 %v1632_v6  ;;  %v1148_v6 = vld [vmem:[#allocation5 + $0x320] sm:$0xff]  ;;  %v1154_v24 = vld [vmem:[#allocation5 + $0x350] sm:$0xff] }
 0x206   : > { %1635 = vmatpush1.bf16.msra.mxu0 %v1634_v9  ;;  %v1718_v8 = vpack.c.bf16 %v1150_v7, %v1148_v6  ;;  %v1152_v21 = vld [vmem:[#allocation5 + $0x340] sm:$0xff]  ;;  %v1170_v7 = vld [vmem:[#allocation5 + $0x3d0] sm:$0xff] }
 0x207   : > { %1687 = vmatpush1.bf16.msra.mxu1 %v1686_v20  ;;  %v1137_v20 = vld [vmem:[#allocation5 + $0x2c8] sm:$0xff]  ;;  %1637 = vmatprep.subr.bf16.mxu0 %v1636_v19  ;;  %v1720_v19 = vpack.c.bf16 %v1155_v17, %v1153_v16  ;;  %v1168_v6 = vld [vmem:[#allocation5 + $0x3c0] sm:$0xff] }
 0x208   : > { %1689 = vmatprep.subr.bf16.mxu1 %v1688_v22  ;;  %v1704_v27 = vpack.c.bf16 %v1139_v26, %v1137_v20  ;;  %v1089_v20 = vld [vmem:[#allocation5 + $0x148] sm:$0xff]  ;;  %v1091_v26 = vld [vmem:[#allocation5 + $0x158] sm:$0xff] }
 0x20a   : > { %1639 = vmatpush1.bf16.msra.mxu0 %v1638_v25  ;;  %v1722_v25 = vpack.c.bf16 %v1154_v24, %v1152_v21  ;;  %v1174_v21 = vld [vmem:[#allocation5 + $0x3f0] sm:$0xff]  ;;  %v1109_v24 = vld [vmem:[#allocation5 + $0x1e8] sm:$0xff] }
 0x20b   : > { %1691 = vmatpush1.bf16.msra.mxu1 %v1690_v44  ;;  %v1141_v44 = vld [vmem:[#allocation5 + $0x2e8] sm:$0xff]  ;;  %1641 = vmatprep.subr.bf16.mxu0 %v1640_v42 }
 0x20c   : > { %1693 = vmatprep.subr.bf16.mxu1 %v1692_v50  ;;  %v1708_v46 = vpack.c.bf16 %v1143_v45, %v1141_v44  ;;  %v1710_v50 = vpack.c.bf16 %v1142_v49, %v1140_v47  ;;  %v1093_v42 = vld [vmem:[#allocation5 + $0x168] sm:$0xff]  ;;  %v1092_v44 = vld [vmem:[#allocation5 + $0x160] sm:$0xff]  ;;  %v1094_v45 = vld [vmem:[#allocation5 + $0x170] sm:$0xff] }
 0x20d   : > { %v1161_v47 = vld [vmem:[#allocation5 + $0x388] sm:$0xff]  ;;  %v1163_v49 = vld [vmem:[#allocation5 + $0x398] sm:$0xff] }
 0x20e   : > { %1643 = vmatpush1.bf16.msra.mxu0 %v1642_v43  ;;  %v1095_v43 = vld [vmem:[#allocation5 + $0x178] sm:$0xff] }
 0x20f   : > { %1695 = vmatpush1.bf16.msra.mxu1 %v1694_v52 }
 0x210   : > { %1697 = vmatprep.subr.bf16.mxu1 %v1696_v0  ;;  %v1080_v0 = vld [vmem:[#allocation5 + $0x100] sm:$0xff] }
 0x211   : > { %v1650_v2 = vpack.c.bf16 %v1082_v1, %v1080_v0  ;;  %v1100_v0 = vld [vmem:[#allocation5 + $0x1a0] sm:$0xff]  ;;  %v1102_v1 = vld [vmem:[#allocation5 + $0x1b0] sm:$0xff] }
 0x213   : > { %1699 = vmatpush1.bf16.msra.mxu1 %v1698_v3  ;;  %v1149_v3 = vld [vmem:[#allocation5 + $0x328] sm:$0xff] }
 0x214   : > { %1701 = vmatprep.subr.bf16.mxu1 %v1700_v12  ;;  %v1716_v5 = vpack.c.bf16 %v1151_v4, %v1149_v3  ;;  %v1652_v12 = vpack.c.bf16 %v1087_v11, %v1085_v10  ;;  %v1169_v3 = vld [vmem:[#allocation5 + $0x3c8] sm:$0xff]  ;;  %v1171_v4 = vld [vmem:[#allocation5 + $0x3d8] sm:$0xff]  ;;  %v1104_v11 = vld [vmem:[#allocation5 + $0x1c0] sm:$0xff] }
 0x215   : > { %v1107_v10 = vld [vmem:[#allocation5 + $0x1d8] sm:$0xff] }
 0x217   : > { %1703 = vmatpush1.bf16.msra.mxu1 %v1702_v15  ;;  %v1654_v15 = vpack.c.bf16 %v1086_v14, %v1084_v13  ;;  %v1106_v13 = vld [vmem:[#allocation5 + $0x1d0] sm:$0xff]  ;;  %v1173_v14 = vld [vmem:[#allocation5 + $0x3e8] sm:$0xff] }
 0x218   : > { %1705 = vmatprep.subr.bf16.mxu1 %v1704_v27  ;;  %v1656_v27 = vpack.c.bf16 %v1091_v26, %v1089_v20  ;;  %v1674_v16 = vpack.c.bf16 %v1106_v13, %v1104_v11  ;;  %v1111_v20 = vld [vmem:[#allocation5 + $0x1f8] sm:$0xff]  ;;  %v1108_v26 = vld [vmem:[#allocation5 + $0x1e0] sm:$0xff] }
 0x219   : > { %v1837_v13 = vld [vmem:[%s2172_s29 + $0x60] sm:$0xff] }
 0x21b   : > { %1707 = vmatpush1.bf16.msra.mxu1 %v1706_v32  ;;  %v1157_v32 = vld [vmem:[#allocation5 + $0x368] sm:$0xff] }
 0x21c   : > { %1709 = vmatprep.subr.bf16.mxu1 %v1708_v46  ;;  %v1724_v35 = vpack.c.bf16 %v1159_v34, %v1157_v32  ;;  %v1662_v46 = vpack.c.bf16 %v1094_v45, %v1092_v44  ;;  %v1825_v44 = vld [vmem:[%s2172_s29] sm:$0xff] }
 0x21f   : > { %1711 = vmatpush1.bf16.msra.mxu1 %v1710_v50  ;;  %v1728_v50 = vpack.c.bf16 %v1163_v49, %v1161_v47  ;;  %v1827_v49 = vld [vmem:[%s2172_s29 + $0x50] sm:$0xff] }
 0x2d5   : > { %v741_v53 = vpop.f32.mrb[0].mxu1 }
 0x2d6   : > { %v746_v54 = vrot.slane %v741_v53, 4  ;;  %v1609_v37 = vpop.f32.mrb[1].mxu1 }
 0x2d7   : > { %v1076_v37 = vld [vmem:[#allocation5 + $0xe0] sm:$0xff] }
 0x2d8   : > { %v748_v55 = vadd.f32 %v746_v54, %v741_v53  ;;  %v1644_v54 = vpack.c.bf16 %v1079_v51, %v1077_v33  ;;  %v1160_v33 = vld [vmem:[#allocation5 + $0x380] sm:$0xff]  ;;  %v1162_v51 = vld [vmem:[#allocation5 + $0x390] sm:$0xff] }
 0x2da   : > { %v1574_v56 = vmul.f32 -1.442695, %v748_v55  ;;  %v1078_v55 = vld [vmem:[#allocation5 + $0xf0] sm:$0xff]  ;;  %1645 = vmatprep.subr.bf16.mxu0 %v1644_v54  ;;  %v1099_v54 = vld [vmem:[#allocation5 + $0x198] sm:$0xff] }
 0x2dc   : > { %1811 = vpow2.f32 %v1574_v56  ;;  %v1646_v56 = vpack.c.bf16 %v1078_v55, %v1076_v37  ;;  %v1096_v55 = vld [vmem:[#allocation5 + $0x180] sm:$0xff] }
 0x2de   : > { %1647 = vmatpush1.bf16.msra.mxu0 %v1646_v56  ;;  %v1098_v56 = vld [vmem:[#allocation5 + $0x190] sm:$0xff] }
 0x2df   : > { %1649 = vmatprep.subr.bf16.mxu0 %v1648_v41 }
 0x2e2   : > { %1651 = vmatpush1.bf16.msra.mxu0 %v1650_v2  ;;  %v1670_v2 = vpack.c.bf16 %v1102_v1, %v1100_v0  ;;  %v1834_v0 = vld [vmem:[%s2172_s29 + $0x88] sm:$0xff] }
 0x2e3   : > { %1653 = vmatprep.subr.bf16.mxu0 %v1652_v12 }
 0x2e6   : > { %v1812_v57 = vpop.eup %1811  ;;  %1655 = vmatpush1.bf16.msra.mxu0 %v1654_v15  ;;  %v1175_v15 = vld [vmem:[#allocation5 + $0x3f8] sm:$0xff] }
 0x2e7   : > { %v752_v36 = vadd.f32 1.0, %v1812_v57  ;;  %v1145_v57 = vld [vmem:[#allocation5 + $0x308] sm:$0xff]  ;;  %1657 = vmatprep.subr.bf16.mxu0 %v1656_v27  ;;  %v1740_v17 = vpack.c.bf16 %v1175_v15, %v1173_v14  ;;  %v1110_v27 = vld [vmem:[#allocation5 + $0x1f0] sm:$0xff] }
 0x2e8   : > { %v1712_v59 = vpack.c.bf16 %v1147_v58, %v1145_v57  ;;  %v1666_v57 = vpack.c.bf16 %v1098_v56, %v1096_v55  ;;  %v1165_v58 = vld [vmem:[#allocation5 + $0x3a8] sm:$0xff]  ;;  %v1829_v55 = vld [vmem:[%s2172_s29 + $0x20] sm:$0xff] }
 0x2e9   : > { %1813 = vrcp.f32 %v752_v36  ;;  %v1144_v36 = vld [vmem:[#allocation5 + $0x300] sm:$0xff]  ;;  %v1838_v15 = vld [vmem:[%s2172_s29 + $0x68] sm:$0xff] }
 0x2ea   : > { %v1714_v48 = vpack.c.bf16 %v1146_v60, %v1144_v36  ;;  %1713 = vmatprep.subr.bf16.mxu1 %v1712_v59  ;;  %v1167_v59 = vld [vmem:[#allocation5 + $0x3b8] sm:$0xff]  ;;  %v1164_v60 = vld [vmem:[#allocation5 + $0x3a0] sm:$0xff] }
 0x2eb   : > { %v1732_v36 = vpack.c.bf16 %v1167_v59, %v1165_v58  ;;  %v1830_v58 = vld [vmem:[%s2172_s29 + $0x40] sm:$0xff] }
 0x2ec   : > { %1715 = vmatpush1.bf16.msra.mxu1 %v1714_v48  ;;  %v1166_v48 = vld [vmem:[#allocation5 + $0x3b0] sm:$0xff] }
 0x2ed   : > { %1717 = vmatprep.subr.bf16.mxu1 %v1716_v5  ;;  %v1734_v61 = vpack.c.bf16 %v1166_v48, %v1164_v60  ;;  %v1736_v5 = vpack.c.bf16 %v1171_v4, %v1169_v3  ;;  %v1832_v48 = vld [vmem:[%s2172_s29 + $0x28] sm:$0xff] }
 0x2f0   : > { %1719 = vmatpush1.bf16.msra.mxu1 %v1718_v8  ;;  %v1738_v8 = vpack.c.bf16 %v1170_v7, %v1168_v6  ;;  %v1836_v7 = vld [vmem:[%s2172_s29 + $0x98] sm:$0xff] }
 0x2f1   : > { %1721 = vmatprep.subr.bf16.mxu1 %v1720_v19  ;;  %v1172_v19 = vld [vmem:[#allocation5 + $0x3e0] sm:$0xff] }
 0x2f3   : > { %v1814_v23 = vpop.eup %1813 }
 0x2f4   : > { %v2332_v22 = vrot.slane %v1814_v23, %v2329_v18  ;;  %v777_v52 = vrot.slane %v1814_v23, %v2335_v38  ;;  %v796_v53 = vrot.slane %v1814_v23, %v795_v28  ;;  %v815_v9 = vrot.slane %v1814_v23, %v814_v63  ;;  %1723 = vmatpush1.bf16.msra.mxu1 %v1722_v25  ;;  %v1156_v28 = vld [vmem:[#allocation5 + $0x360] sm:$0xff]  ;;  %v1103_v63 = vld [vmem:[#allocation5 + $0x1b8] sm:$0xff] }
 0x2f5   : > { %v1658_v23 = vpack.c.bf16 %v1090_v31, %v1088_v29  ;;  %v1726_v40 = vpack.c.bf16 %v1158_v39, %v1156_v28  ;;  %1725 = vmatprep.subr.bf16.mxu1 %v1724_v35  ;;  %v1668_v41 = vpack.c.bf16 %v1103_v63, %v1101_v62  ;;  %v1742_v25 = vpack.c.bf16 %v1174_v21, %v1172_v19  ;;  %v1833_v63 = vld [vmem:[%s2172_s29 + $0x80] sm:$0xff] }
 0x2f6   : > { %764 = vbcast.lane.b32.xlu1 %v2332_v22, 264  ;;  %760 = vbcast.lane.b32.xlu0 %v2332_v22, 256  ;;  %v1676_v29 = vpack.c.bf16 %v1111_v20, %v1109_v24  ;;  %v1678_v31 = vpack.c.bf16 %v1110_v27, %v1108_v26  ;;  %v1839_v21 = vld [vmem:[%s2172_s29 + $0xa0] sm:$0xff] }
 0x2f7   : > { %1659 = vmatpush1.bf16.msra.mxu0 %v1658_v23 }
 0x2f8   : > { %1727 = vmatpush1.bf16.msra.mxu1 %v1726_v40  ;;  %v1823_v40 = vld [vmem:[%s2172_s29 + $0x10] sm:$0xff] }
 0x2f9   : > { %1729 = vmatprep.subr.bf16.mxu1 %v1728_v50 }
 0x2fa   : > { %779 = vbcast.lane.b32.xlu1 %v777_v52, 256  ;;  %798 = vbcast.lane.b32.xlu0 %v796_v53, 256 }
 0x2fe   : > { %783 = vbcast.lane.b32.xlu1 %v777_v52, 264  ;;  %768 = vbcast.lane.b32.xlu0 %v2332_v22, 272 }
 0x302   : > { %802 = vbcast.lane.b32.xlu1 %v796_v53, 264  ;;  %817 = vbcast.lane.b32.xlu0 %v815_v9, 256 }
 0x306   : > { %787 = vbcast.lane.b32.xlu1 %v777_v52, 272  ;;  %806 = vbcast.lane.b32.xlu0 %v796_v53, 272 }
 0x30a   : > { %821 = vbcast.lane.b32.xlu1 %v815_v9, 264  ;;  %791 = vbcast.lane.b32.xlu0 %v777_v52, 280  ;;  %v1730_v52 = vpack.c.bf16 %v1162_v51, %v1160_v33  ;;  %v1828_v33 = vld [vmem:[%s2172_s29 + $0x58] sm:$0xff] }
 0x30c   : > { %1731 = vmatpush1.bf16.msra.mxu1 %v1730_v52 }
 0x30d   : > { %1733 = vmatprep.subr.bf16.mxu1 %v1732_v36  ;;  %v1831_v36 = vld [vmem:[%s2172_s29 + $0x48] sm:$0xff] }
 0x30e   : > { %772 = vbcast.lane.b32.xlu1 %v2332_v22, 280  ;;  %810 = vbcast.lane.b32.xlu0 %v796_v53, 280  ;;  %v1660_v22 = vpack.c.bf16 %v1095_v43, %v1093_v42  ;;  %v1097_v53 = vld [vmem:[#allocation5 + $0x188] sm:$0xff]  ;;  %v1824_v43 = vld [vmem:[%s2172_s29 + $0x18] sm:$0xff] }
 0x30f   : > { %v1664_v37 = vpack.c.bf16 %v1099_v54, %v1097_v53 }
 0x310   : > { %1661 = vmatprep.subr.bf16.mxu0 %v1660_v22  ;;  %1735 = vmatpush1.bf16.msra.mxu1 %v1734_v61 }
 0x311   : > { %1663 = vmatpush1.bf16.msra.mxu0 %v1662_v46  ;;  %1737 = vmatprep.subr.bf16.mxu1 %v1736_v5  ;;  %v1826_v46 = vld [vmem:[%s2172_s29 + $0x8] sm:$0xff] }
 0x312   : > { %825 = vbcast.lane.b32.xlu1 %v815_v9, 272  ;;  %1665 = vmatprep.subr.bf16.mxu0 %v1664_v37 }
 0x314   : > { %1739 = vmatpush1.bf16.msra.mxu1 %v1738_v8 }
 0x315   : > { %1667 = vmatpush1.bf16.msra.mxu0 %v1666_v57  ;;  %1741 = vmatprep.subr.bf16.mxu1 %v1740_v17 }
 0x316   : > { %829 = vbcast.lane.b32.xlu1 %v815_v9, 280  ;;  %1669 = vmatprep.subr.bf16.mxu0 %v1668_v41  ;;  %v1105_v9 = vld [vmem:[#allocation5 + $0x1c8] sm:$0xff] }
 0x317   : > { %v1672_v12 = vpack.c.bf16 %v1107_v10, %v1105_v9 }
 0x318   : > { %1743 = vmatpush1.bf16.msra.mxu1 %v1742_v25  ;;  %v1840_v25 = vld [vmem:[%s2172_s29 + $0xa8] sm:$0xff] }
 0x319   : > { %1671 = vmatpush1.bf16.msra.mxu0 %v1670_v2  ;;  %v1835_v2 = vld [vmem:[%s2172_s29 + $0x90] sm:$0xff] }
 0x31a   : > { %1673 = vmatprep.subr.bf16.mxu0 %v1672_v12 }
 0x31d   : > { %1675 = vmatpush1.bf16.msra.mxu0 %v1674_v16 }
 0x31e   : > { %1677 = vmatprep.subr.bf16.mxu0 %v1676_v29  ;;  %v1841_v29 = vld [vmem:[%s2172_s29 + $0xc0] sm:$0xff] }
 0x321   : > { %1679 = vmatpush1.bf16.msra.mxu0 %v1678_v31 }
 0x368   : > { %v765_v23 = vpop.permute.xlu1 %764  ;;  %v761_v32 = vpop.permute.xlu0 %760 }
 0x369   : > { %v2345_v42 = vmul.f32 %v1823_v40, %v765_v23  ;;  %v2348_v22 = vmul.f32 %v1824_v43, %v765_v23  ;;  %v2351_v45 = vmul.f32 %v1825_v44, %v761_v32  ;;  %v2354_v47 = vmul.f32 %v1826_v46, %v761_v32  ;;  %v1842_v23 = vld [vmem:[%s2172_s29 + $0xc8] sm:$0xff]  ;;  %v1843_v46 = vld [vmem:[%s2172_s29 + $0xd0] sm:$0xff] }
 0x36b   : > { %v863_v54 = vadd.f32 %v2345_v42, %v2351_v45  ;;  %v872_v37 = vadd.f32 %v2348_v22, %v2354_v47  ;;  %v944_v57 = vmax.f32 %v2351_v45, %v2345_v42  ;;  %v953_v62 = vmax.f32 %v2354_v47, %v2348_v22 }
 0x36c   : > { %v780_v34 = vpop.permute.xlu1 %779  ;;  %v799_v35 = vpop.permute.xlu0 %798 }
 0x36d   : > { %v2372_v59 = vmul.f32 %v1830_v58, %v780_v34  ;;  %v2375_v60 = vmul.f32 %v1831_v36, %v780_v34  ;;  %v2383_v41 = vmul.f32 %v1833_v63, %v799_v35  ;;  %v2386_v1 = vmul.f32 %v1834_v0, %v799_v35 }
 0x370   : > { %v784_v28 = vpop.permute.xlu1 %783  ;;  %v769_v39 = vpop.permute.xlu0 %768 }
 0x371   : > { %v2357_v50 = vmul.f32 %v1827_v49, %v784_v28  ;;  %v2360_v51 = vmul.f32 %v1828_v33, %v784_v28  ;;  %v2367_v56 = vmul.f32 %v1829_v55, %v769_v39  ;;  %v2378_v61 = vmul.f32 %v1832_v48, %v769_v39  ;;  %v1844_v33 = vld [vmem:[%s2172_s29 + $0x70] sm:$0xff] }
 0x373   : > { %v881_v4 = vadd.f32 %v2357_v50, %v2372_v59  ;;  %v890_v5 = vadd.f32 %v2360_v51, %v2375_v60  ;;  %v962_v6 = vmax.f32 %v2372_v59, %v2357_v50  ;;  %v971_v11 = vmax.f32 %v2375_v60, %v2360_v51 }
 0x374   : > { %v803_v52 = vpop.permute.xlu1 %802  ;;  %v818_v53 = vpop.permute.xlu0 %817  ;;  %v864_v12 = vadd.f32 %v863_v54, %v2367_v56  ;;  %v873_v17 = vadd.f32 %v872_v37, %v2378_v61  ;;  %v945_v19 = vmax.f32 %v944_v57, %v2367_v56  ;;  %v954_v26 = vmax.f32 %v953_v62, %v2378_v61  ;;  %v1846_v62 = vld [vmem:[%s2172_s29 + $0xd8] sm:$0xff] }
 0x375   : > { %v2389_v3 = vmul.f32 %v1835_v2, %v803_v52  ;;  %v2398_v8 = vmul.f32 %v1836_v7, %v803_v52  ;;  %v2421_v31 = vmul.f32 %v1841_v29, %v818_v53  ;;  %v2424_v32 = vmul.f32 %v1842_v23, %v818_v53  ;;  %v1845_v53 = vld [vmem:[%s2172_s29 + $0x78] sm:$0xff] }
 0x377   : > { %2705 = vst [vmem:[#allocation11_spill] sm:$0xff] %v2398_v8  ;;  %v899_v27 = vadd.f32 %v2389_v3, %v2383_v41  ;;  %2708 = vst [vmem:[#allocation14_spill] sm:$0xff] %v2421_v31  ;;  %v908_v34 = vadd.f32 %v2398_v8, %v2386_v1  ;;  %v980_v35 = vmax.f32 %v2383_v41, %v2389_v3 }
 0x378   : > { %v788_v9 = vpop.permute.xlu1 %787  ;;  %v807_v10 = vpop.permute.xlu0 %806  ;;  %2709 = vst [vmem:[#allocation15_spill] sm:$0xff] %v2424_v32  ;;  %v989_v28 = vmax.f32 %v2386_v1, %v2398_v8 }
 0x379   : > { %v2404_v14 = vmul.f32 %v1837_v13, %v788_v9  ;;  %v2407_v16 = vmul.f32 %v1838_v15, %v788_v9  ;;  %v2412_v24 = vmul.f32 %v1839_v21, %v807_v10  ;;  %v2415_v20 = vmul.f32 %v1840_v25, %v807_v10  ;;  %v1847_v10 = vld [vmem:[%s2172_s29 + $0x30] sm:$0xff]  ;;  %v1848_v13 = vld [vmem:[%s2172_s29 + $0x38] sm:$0xff] }
 0x37a   : > { %v1849_v21 = vld [vmem:[%s2172_s29 + $0xb0] sm:$0xff] }
 0x37b   : > { %2706 = vst [vmem:[#allocation12_spill] sm:$0xff] %v2412_v24  ;;  %2707 = vst [vmem:[#allocation13_spill] sm:$0xff] %v2415_v20  ;;  %v882_v39 = vadd.f32 %v881_v4, %v2404_v14  ;;  %v891_v44 = vadd.f32 %v890_v5, %v2407_v16  ;;  %v963_v37 = vmax.f32 %v962_v6, %v2404_v14 }
 0x37c   : > { %v822_v40 = vpop.permute.xlu1 %821  ;;  %v792_v43 = vpop.permute.xlu0 %791  ;;  %v972_v55 = vmax.f32 %v971_v11, %v2407_v16  ;;  %v2446_v57 = vadd.f32 %v899_v27, %v2412_v24  ;;  %v2449_v58 = vadd.f32 %v908_v34, %v2415_v20  ;;  %v2452_v36 = vmax.f32 %v980_v35, %v2412_v24  ;;  %v1850_v27 = vld [vmem:[%s2172_s29 + $0xb8] sm:$0xff] }
 0x37d   : > { %v2435_v49 = vmul.f32 %v1843_v46, %v822_v40  ;;  %v2438_v52 = vmul.f32 %v1844_v33, %v792_v43  ;;  %v2441_v54 = vmul.f32 %v1845_v53, %v792_v43  ;;  %v2455_v48 = vmax.f32 %v989_v28, %v2415_v20 }
 0x37e   : > { %v2458_v63 = vmul.f32 %v1846_v62, %v822_v40 }
 0x37f   : > { %2710 = vst [vmem:[#allocation16_spill] sm:$0xff] %v2435_v49  ;;  %v2462_v0 = vadd.f32 %v2435_v49, %v2421_v31  ;;  %v883_v2 = vadd.f32 %v882_v39, %v2438_v52  ;;  %v892_v4 = vadd.f32 %v891_v44, %v2441_v54  ;;  %v964_v5 = vmax.f32 %v963_v37, %v2438_v52 }
 0x380   : > { %2711 = vst [vmem:[#allocation17_spill] sm:$0xff] %v2458_v63  ;;  %v973_v6 = vmax.f32 %v972_v55, %v2441_v54  ;;  %v773_v7 = vpop.permute.xlu1 %772  ;;  %v811_v9 = vpop.permute.xlu0 %810 }
 0x381   : > { %v2469_v11 = vmul.f32 %v1847_v10, %v773_v7  ;;  %v2472_v15 = vmul.f32 %v1848_v13, %v773_v7  ;;  %v2475_v25 = vmul.f32 %v1849_v21, %v811_v9  ;;  %v2478_v29 = vmul.f32 %v1850_v27, %v811_v9 }
 0x382   : > { %v884_v23 = vrot.slane %v883_v2, 4  ;;  %v893_v34 = vrot.slane %v892_v4, 4  ;;  %v965_v35 = vrot.slane %v964_v5, 4  ;;  %v974_v28 = vrot.slane %v973_v6, 4 }
 0x383   : > { %2712 = vst [vmem:[#allocation18_spill] sm:$0xff] %v2475_v25  ;;  %2713 = vst [vmem:[#allocation19_spill] sm:$0xff] %v2478_v29  ;;  %v865_v39 = vadd.f32 %v864_v12, %v2469_v11  ;;  %v874_v40 = vadd.f32 %v873_v17, %v2472_v15  ;;  %v946_v43 = vmax.f32 %v945_v19, %v2469_v11 }
 0x384   : > { %v955_v44 = vmax.f32 %v954_v26, %v2472_v15  ;;  %v885_v46 = vadd.f32 %v884_v23, %v883_v2  ;;  %v894_v33 = vadd.f32 %v893_v34, %v892_v4  ;;  %v966_v53 = vmax.f32 %v964_v5, %v965_v35 }
 0x385   : > { %v975_v37 = vmax.f32 %v973_v6, %v974_v28  ;;  %v866_v55 = vrot.slane %v865_v39, 4  ;;  %v875_v62 = vrot.slane %v874_v40, 4  ;;  %v947_v7 = vrot.slane %v946_v43, 4 }
 0x386   : > { %v956_v9 = vrot.slane %v955_v44, 4  ;;  %v886_v10 = vrot.slane %v885_v46, 2  ;;  %v895_v13 = vrot.slane %v894_v33, 2  ;;  %v967_v21 = vrot.slane %v966_v53, 2 }
 0x387   : > { %v976_v27 = vrot.slane %v975_v37, 2  ;;  %v867_v20 = vadd.f32 %v866_v55, %v865_v39  ;;  %v876_v12 = vadd.f32 %v875_v62, %v874_v40  ;;  %v948_v24 = vmax.f32 %v946_v43, %v947_v7  ;;  %v826_v40 = vpop.permute.xlu1 %825 }
 0x388   : > { %v957_v17 = vmax.f32 %v955_v44, %v956_v9  ;;  %v887_v8 = vadd.f32 %v886_v10, %v885_v46  ;;  %v2484_v19 = vadd.f32 %v895_v13, %v894_v33  ;;  %v968_v26 = vmax.f32 %v966_v53, %v967_v21 }
 0x389   : > { %v2486_v2 = vmax.f32 %v975_v37, %v976_v27  ;;  %v868_v4 = vrot.slane %v867_v20, 2  ;;  %v877_v5 = vrot.slane %v876_v12, 2  ;;  %v949_v6 = vrot.slane %v948_v24, 2 }
 0x38a   : > { %v958_v23 = vrot.slane %v957_v17, 2  ;;  %v926_v34 = vadd.f32 %v2458_v63, %v2424_v32  ;;  %v998_v35 = vmax.f32 %v2421_v31, %v2435_v49  ;;  %v888_v28 = vrot.slane %v887_v8, 1 }
 0x38b   : > { %v969_v39 = vrot.slane %v968_v26, 1  ;;  %v1007_v43 = vmax.f32 %v2424_v32, %v2458_v63  ;;  %v869_v44 = vadd.f32 %v868_v4, %v867_v20  ;;  %v878_v46 = vadd.f32 %v877_v5, %v876_v12 }
 0x38c   : > { %v950_v33 = vmax.f32 %v948_v24, %v949_v6  ;;  %v978_v37 = vrot.slane %v2486_v2, 1  ;;  %v901_v55 = vadd.f32 %v2446_v57, %v2475_v25  ;;  %v910_v62 = vadd.f32 %v2449_v58, %v2478_v29  ;;  %v1851_v57 = vld [vmem:[%s2172_s29 + $0xe0] sm:$0xff]  ;;  %v1852_v58 = vld [vmem:[%s2172_s29 + $0xe8] sm:$0xff] }
 0x38d   : > { %v2500_v7 = vadd.f32 %v888_v28, %v887_v8  ;;  %v2502_v9 = vmax.f32 %v968_v26, %v969_v39  ;;  %v870_v10 = vrot.slane %v869_v44, 1  ;;  %v959_v20 = vmax.f32 %v957_v17, %v958_v23  ;;  %v830_v28 = vpop.permute.xlu1 %829 }
 0x38e   : > { %v902_v13 = vrot.slane %v901_v55, 4  ;;  %v911_v21 = vrot.slane %v910_v62, 4  ;;  %v982_v24 = vmax.f32 %v2452_v36, %v2475_v25  ;;  %v991_v27 = vmax.f32 %v2455_v48, %v2478_v29 }
 0x38f   : > { %v879_v12 = vrot.slane %v878_v46, 1  ;;  %v951_v4 = vrot.slane %v950_v33, 1  ;;  %v2509_v5 = vmul.f32 %v1851_v57, %v826_v40  ;;  %v2512_v8 = vmul.f32 %v1852_v58, %v826_v40 }
 0x390   : > { %v903_v26 = vadd.f32 %v902_v13, %v901_v55  ;;  %v912_v6 = vadd.f32 %v911_v21, %v910_v62  ;;  %v983_v17 = vrot.slane %v982_v24, 4  ;;  %v992_v23 = vrot.slane %v991_v27, 4  ;;  %v1853_v62 = vld [vmem:[%s2172_s29 + $0xf0] sm:$0xff]  ;;  %v1854_v21 = vld [vmem:[%s2172_s29 + $0xf8] sm:$0xff]  ;;  %s1462_s29 = scalar_lea.sflag [#allocation4], %s2166_s11 }
 0x391   : > { %2714 = vst [vmem:[#allocation20_spill] sm:$0xff] %v2509_v5  ;;  %2715 = vst [vmem:[#allocation21_spill] sm:$0xff] %v2512_v8  ;;  %v871_v39 = vadd.f32 %v870_v10, %v869_v44  ;;  %v960_v36 = vrot.slane %v959_v20, 1  ;;  %v918_v48 = vadd.f32 %v2462_v0, %v2509_v5  ;;  %v927_v53 = vadd.f32 %v926_v34, %v2512_v8 }
 0x392   : > { %v904_v63 = vrot.slane %v903_v26, 2  ;;  %v913_v57 = vrot.slane %v912_v6, 2  ;;  %v984_v49 = vmax.f32 %v982_v24, %v983_v17  ;;  %v993_v32 = vmax.f32 %v991_v27, %v992_v23 }
 0x393   : > { %v999_v40 = vmax.f32 %v998_v35, %v2509_v5  ;;  %v1008_v55 = vmax.f32 %v1007_v43, %v2512_v8  ;;  %v2520_v13 = vmul.f32 %v1853_v62, %v830_v28  ;;  %v2523_v58 = vmul.f32 %v1854_v21, %v830_v28 }
 0x394   : > { %v952_v44 = vmax.f32 %v950_v33, %v951_v4  ;;  %v905_v10 = vadd.f32 %v904_v63, %v903_v26  ;;  %v985_v31 = vrot.slane %v984_v49, 2  ;;  %v994_v0 = vrot.slane %v993_v32, 2 }
 0x395   : > { %v919_v34 = vadd.f32 %v918_v48, %v2520_v13  ;;  %v928_v29 = vadd.f32 %v927_v53, %v2523_v58  ;;  %v1000_v24 = vmax.f32 %v999_v40, %v2520_v13  ;;  %v1009_v35 = vmax.f32 %v1008_v55, %v2523_v58 }
 0x396   : > { %v914_v27 = vadd.f32 %v913_v57, %v912_v6  ;;  %v986_v43 = vmax.f32 %v984_v49, %v985_v31  ;;  %v995_v17 = vmax.f32 %v993_v32, %v994_v0  ;;  %v961_v23 = vmax.f32 %v959_v20, %v960_v36 }
 0x397   : > { %v920_v62 = vrot.slane %v919_v34, 4  ;;  %v929_v8 = vrot.slane %v928_v29, 4  ;;  %v1001_v28 = vrot.slane %v1000_v24, 4  ;;  %v1010_v21 = vrot.slane %v1009_v35, 4 }
 0x398   : > { %v906_v33 = vrot.slane %v905_v10, 1  ;;  %v979_v63 = vmax.f32 %v2486_v2, %v978_v37  ;;  %v996_v4 = vrot.slane %v995_v17, 1  ;;  %v880_v26 = vadd.f32 %v879_v12, %v878_v46 }
 0x399   : > { %v921_v48 = vadd.f32 %v920_v62, %v919_v34  ;;  %v930_v5 = vadd.f32 %v929_v8, %v928_v29  ;;  %v1002_v53 = vmax.f32 %v1000_v24, %v1001_v28  ;;  %v1011_v25 = vmax.f32 %v1009_v35, %v1010_v21 }
 0x39a   : > { %v987_v40 = vrot.slane %v986_v43, 1  ;;  %v1043_v55 = vsel %vm479_vm4, %v979_v63, %v961_v23  ;;  %v2716_v31 = vrot.slane %v2484_v19, 1  ;;  %v915_v49 = vrot.slane %v914_v27, 1 }
 0x39b   : > { %v922_v20 = vrot.slane %v921_v48, 2  ;;  %v931_v6 = vrot.slane %v930_v5, 2  ;;  %v1003_v36 = vrot.slane %v1002_v53, 2  ;;  %v1012_v57 = vrot.slane %v1011_v25, 2 }
 0x39c   : > { %v898_v32 = vadd.f32 %v2716_v31, %v2484_v19  ;;  %v997_v0 = vmax.f32 %v995_v17, %v996_v4  ;;  %v1040_v2 = vsel %vm479_vm4, %v2502_v9, %v952_v44  ;;  %v916_v46 = vadd.f32 %v915_v49, %v914_v27 }
 0x39d   : > { %v937_v29 = vmul.f32 0.03125, %v880_v26  ;;  %v923_v37 = vadd.f32 %v922_v20, %v921_v48  ;;  %v1004_v12 = vmax.f32 %v1002_v53, %v1003_v36  ;;  %v1013_v8 = vmax.f32 %v1011_v25, %v1012_v57 }
 0x39e   : > { %v932_v34 = vadd.f32 %v931_v6, %v930_v5  ;;  %v988_v24 = vmax.f32 %v986_v43, %v987_v40  ;;  %v939_v35 = vmul.f32 0.03125, %v898_v32  ;;  %v907_v23 = vadd.f32 %v906_v33, %v905_v10 }
 0x39f   : > { %v936_v62 = vmul.f32 0.03125, %v871_v39  ;;  %v1014_v19 = vrot.slane %v1013_v8, 1  ;;  %v1005_v28 = vrot.slane %v1004_v12, 1  ;;  %v924_v63 = vrot.slane %v923_v37, 1 }
 0x3a0   : > { %v933_v21 = vrot.slane %v932_v34, 1  ;;  %v941_v31 = vmul.f32 0.03125, %v916_v46  ;;  %v1027_v17 = vsel %vm479_vm4, %v939_v35, %v937_v29  ;;  %v938_v4 = vmul.f32 0.03125, %v2500_v7 }
 0x3a1   : > { %v1015_v9 = vmax.f32 %v1013_v8, %v1014_v19  ;;  %v1006_v44 = vmax.f32 %v1004_v12, %v1005_v28  ;;  %v940_v26 = vmul.f32 0.03125, %v907_v23  ;;  %v1044_v25 = vsel %vm481_vm7, %v997_v0, %v1043_v55 }
 0x3a2   : > { %v934_v27 = vadd.f32 %v933_v21, %v932_v34  ;;  %v1041_v5 = vsel %vm481_vm7, %v988_v24, %v1040_v2  ;;  %v925_v43 = vadd.f32 %v924_v63, %v923_v37  ;;  %v1024_v39 = vsel %vm479_vm4, %v938_v4, %v936_v62 }
 0x3a3   : > { %v1045_v10 = vsel %vm483_vm8, %v1015_v9, %v1044_v25  ;;  %v1042_v33 = vsel %vm483_vm8, %v1006_v44, %v1041_v5  ;;  %v1028_v53 = vsel %vm481_vm7, %v941_v31, %v1027_v17  ;;  %v1025_v32 = vsel %vm481_vm7, %v940_v26, %v1024_v39 }
 0x3a4   : > { %v943_v48 = vmul.f32 0.03125, %v934_v27  ;;  %1311 = vmatprep.mubr.f32.mxu1 %v1045_v10  ;;  %v942_v7 = vmul.f32 0.03125, %v925_v43  ;;  %v1992_v34 = vmov 1966171168  }
 0x3a5   : > { %1312 = vmatmul.mubr.f32.vlgmr.msra.gmra.mrb[2].mxu1 %v1042_v33  ;;  %v1334_v24 = vunpack.c.l.s4 %v1992_v34 }
 0x3a6   : > { %v1029_v40 = vsel %vm483_vm8, %v943_v48, %v1028_v53  ;;  %v1026_v55 = vsel %vm483_vm8, %v942_v7, %v1025_v32 }
 0x3a7   : > { %1240 = vmatprep.mubr.f32.mxu0 %v1029_v40  ;;  %v1335_v35 = vunpack.c.0.s8 %v1334_v24 }
 0x3a8   : > { %1241 = vmatmul.mubr.f32.vlgmr.msra.gmra.mrb[2].mxu0 %v1026_v55 }
 0x3a9   : > { %v1338_v62 = vsub.s32 %v1335_v35, %v2236_v30 }
 0x478   : > { %v1313_v49 = vpop.f32.mrb[2].mxu1 }
 0x479   : > { %v1315_v20 = vpop.f32.mrb[3].mxu1 }
 0x47b   : > { %v1242_v6 = vpop.f32.mrb[2].mxu0 }
 0x47c   : > { %v1314_v36 = vadd.f32 %v1313_v49, %v1242_v6  ;;  %v1244_v57 = vpop.f32.mrb[3].mxu0  ;;  %v2721_v49 = vld [vmem:[#allocation19_spill] sm:$0xff] }
 0x47d   : > { %v1316_v0 = vadd.f32 %v1315_v20, %v1244_v57  ;;  %v2722_v20 = vld [vmem:[#allocation14_spill] sm:$0xff]  ;;  %v2723_v6 = vld [vmem:[#allocation15_spill] sm:$0xff]  ;;  %v2724_v57 = vld [vmem:[#allocation16_spill] sm:$0xff] }
 0x47e   : > { %v1575_v2 = vmul.f32 -1.442695, %v1314_v36 }
 0x47f   : > { %v1576_v46 = vmul.f32 -1.442695, %v1316_v0 }
 0x480   : > { %1815 = vpow2.f32 %v1575_v2  ;;  %v2725_v2 = vld [vmem:[#allocation17_spill] sm:$0xff] }
 0x481   : > { %1817 = vpow2.f32 %v1576_v46 }
 0x48a   : > { %v1816_v29 = vpop.eup %1815 }
 0x48b   : > { %v1818_v37 = vpop.eup %1817  ;;  %v1324_v12 = vadd.f32 1.0, %v1816_v29  ;;  %v2726_v29 = vld [vmem:[#allocation20_spill] sm:$0xff] }
 0x48c   : > { %v1325_v8 = vadd.f32 1.0, %v1818_v37 }
 0x48d   : > { %1819 = vrcp.f32 %v1324_v12  ;;  %v2727_v12 = vld [vmem:[#allocation21_spill] sm:$0xff] }
 0x48e   : > { %1821 = vrcp.f32 %v1325_v8 }
 0x497   : > { %v1820_v23 = vpop.eup %1819 }
 0x498   : > { %v1822_v19 = vpop.eup %1821 }
 0x499   : > { %v1332_v28 = vcombine.low %v1820_v23, %v1822_v19 }
 0x49b   : > { %v1339_v21 = vrot.slane %v1332_v28, %v1338_v62 }
 0x49d   : > { %v1340_v63 = vcombine.high %v1339_v21, %v1339_v21  ;;  %v1347_v31 = vrot.slane %v1339_v21, %v1338_v62 }
 0x49f   : > { %v1354_v17 = vrot.slane %v1340_v63, %v1338_v62  ;;  %v1355_v4 = vcombine.high %v1347_v31, %v1347_v31  ;;  %v1360_v9 = vrot.slane %v1347_v31, %v2329_v18  ;;  %v1364_v44 = vrot.slane %v1347_v31, %v2335_v38 }
 0x4a1   : > { %v1356_v27 = vcombine.high %v1354_v17, %v1354_v17  ;;  %v1368_v26 = vrot.slane %v1354_v17, %v2329_v18  ;;  %v1372_v25 = vrot.slane %v1354_v17, %v2335_v38  ;;  %v1376_v5 = vrot.slane %v1355_v4, %v2329_v18 }
 0x4a2   : > { %v1380_v30 = vrot.slane %v1355_v4, %v2335_v38  ;;  %v1397_v43 = vmul.f32 %v1360_v9, %v2351_v45  ;;  %v1398_v39 = vmul.f32 %v1364_v44, %v2354_v47  ;;  %v1399_v10 = vmul.f32 %v1360_v9, %v2345_v42 }
 0x4a3   : > { %v1384_v33 = vrot.slane %v1356_v27, %v2329_v18  ;;  %v1388_v48 = vrot.slane %v1356_v27, %v2335_v38  ;;  %v1400_v53 = vmul.f32 %v1364_v44, %v2348_v22  ;;  %v1401_v7 = vmul.f32 %v1360_v9, %v2367_v56 }
 0x4a4   : > { %v1402_v40 = vmul.f32 %v1364_v44, %v2378_v61  ;;  %v1403_v32 = vmul.f32 %v1360_v9, %v2469_v11  ;;  %v1404_v55 = vmul.f32 %v1364_v44, %v2472_v15  ;;  %v1405_v45 = vmul.f32 %v1368_v26, %v2372_v59  ;;  %1429 = vst [vmem:[%s2567_s8] sm:$0xff] %v1397_v43  ;;  %v2717_v61 = vld [vmem:[#allocation11_spill] sm:$0xff]  ;;  %v2720_v11 = vld [vmem:[#allocation18_spill] sm:$0xff] }
 0x4a5   : > { %1430 = vst [vmem:[%s2567_s8 + $0x8] sm:$0xff] %v1398_v39  ;;  %1431 = vst [vmem:[%s2567_s8 + $0x10] sm:$0xff] %v1399_v10  ;;  %v1406_v18 = vmul.f32 %v1372_v25, %v2375_v60  ;;  %v1407_v38 = vmul.f32 %v1368_v26, %v2357_v50  ;;  %v1408_v42 = vmul.f32 %v1372_v25, %v2360_v51 }
 0x4a6   : > { %v1409_v22 = vmul.f32 %v1368_v26, %v2404_v14  ;;  %1432 = vst [vmem:[%s2567_s8 + $0x18] sm:$0xff] %v1400_v53  ;;  %1433 = vst [vmem:[%s2567_s8 + $0x20] sm:$0xff] %v1401_v7  ;;  %v1410_v47 = vmul.f32 %v1372_v25, %v2407_v16  ;;  %v1411_v56 = vmul.f32 %v1368_v26, %v2438_v52  ;;  %v2718_v16 = vld [vmem:[#allocation12_spill] sm:$0xff] }
 0x4a7   : > { %v1412_v59 = vmul.f32 %v1372_v25, %v2441_v54  ;;  %v1413_v60 = vmul.f32 %v1376_v5, %v2383_v41  ;;  %1434 = vst [vmem:[%s2567_s8 + $0x28] sm:$0xff] %v1402_v40  ;;  %1435 = vst [vmem:[%s2567_s8 + $0x30] sm:$0xff] %v1403_v32  ;;  %v1414_v50 = vmul.f32 %v1380_v30, %v2386_v1  ;;  %v2719_v41 = vld [vmem:[#allocation13_spill] sm:$0xff] }
 0x4a8   : > { %1436 = vst [vmem:[%s2567_s8 + $0x38] sm:$0xff] %v1404_v55  ;;  %1437 = vst [vmem:[%s2567_s8 + $0x40] sm:$0xff] %v1405_v45  ;;  %v1415_v51 = vmul.f32 %v1376_v5, %v2389_v3  ;;  %v1416_v14 = vmul.f32 %v1380_v30, %v2717_v61  ;;  %v1417_v52 = vmul.f32 %v1376_v5, %v2718_v16 }
 0x4a9   : > { %1438 = vst [vmem:[%s2567_s8 + $0x48] sm:$0xff] %v1406_v18  ;;  %1439 = vst [vmem:[%s2567_s8 + $0x50] sm:$0xff] %v1407_v38  ;;  %v1418_v54 = vmul.f32 %v1380_v30, %v2719_v41  ;;  %v1419_v15 = vmul.f32 %v1376_v5, %v2720_v11  ;;  %v1420_v1 = vmul.f32 %v1380_v30, %v2721_v49 }
 0x4aa   : > { %1440 = vst [vmem:[%s2567_s8 + $0x58] sm:$0xff] %v1408_v42  ;;  %1441 = vst [vmem:[%s2567_s8 + $0x60] sm:$0xff] %v1409_v22  ;;  %v1421_v3 = vmul.f32 %v1384_v33, %v2722_v20  ;;  %v1422_v36 = vmul.f32 %v1388_v48, %v2723_v6  ;;  %v1423_v0 = vmul.f32 %v1384_v33, %v2724_v57 }
 0x4ab   : > { %1442 = vst [vmem:[%s2567_s8 + $0x68] sm:$0xff] %v1410_v47  ;;  %1443 = vst [vmem:[%s2567_s8 + $0x70] sm:$0xff] %v1411_v56  ;;  %v1424_v46 = vmul.f32 %v1388_v48, %v2725_v2  ;;  %v1425_v37 = vmul.f32 %v1384_v33, %v2726_v29  ;;  %v1426_v8 = vmul.f32 %v1388_v48, %v2727_v12 }
 0x4ac   : > { %1444 = vst [vmem:[%s2567_s8 + $0x78] sm:$0xff] %v1412_v59  ;;  %1445 = vst [vmem:[%s2567_s8 + $0x80] sm:$0xff] %v1413_v60  ;;  %v1427_v34 = vmul.f32 %v1384_v33, %v2520_v13  ;;  %v1428_v24 = vmul.f32 %v1388_v48, %v2523_v58 }
 0x4ad   : > { %1446 = vst [vmem:[%s2567_s8 + $0x88] sm:$0xff] %v1414_v50  ;;  %1447 = vst [vmem:[%s2567_s8 + $0x90] sm:$0xff] %v1415_v51 }
 0x4ae   : > { %1448 = vst [vmem:[%s2567_s8 + $0x98] sm:$0xff] %v1416_v14  ;;  %1449 = vst [vmem:[%s2567_s8 + $0xa0] sm:$0xff] %v1417_v52 }
 0x4af   : > { %1450 = vst [vmem:[%s2567_s8 + $0xa8] sm:$0xff] %v1418_v54  ;;  %1451 = vst [vmem:[%s2567_s8 + $0xb0] sm:$0xff] %v1419_v15 }
 0x4b0   : > { %1452 = vst [vmem:[%s2567_s8 + $0xb8] sm:$0xff] %v1420_v1  ;;  %1453 = vst [vmem:[%s2567_s8 + $0xc0] sm:$0xff] %v1421_v3 }
 0x4b1   : > { %1454 = vst [vmem:[%s2567_s8 + $0xc8] sm:$0xff] %v1422_v36  ;;  %1455 = vst [vmem:[%s2567_s8 + $0xd0] sm:$0xff] %v1423_v0 }
 0x4b2   : > { %1456 = vst [vmem:[%s2567_s8 + $0xd8] sm:$0xff] %v1424_v46  ;;  %1457 = vst [vmem:[%s2567_s8 + $0xe0] sm:$0xff] %v1425_v37 }
 0x4b3   : > { %1458 = vst [vmem:[%s2567_s8 + $0xe8] sm:$0xff] %v1426_v8  ;;  %1459 = vst [vmem:[%s2567_s8 + $0xf0] sm:$0xff] %v1427_v34 }
 0x4b4   : > { %1460 = vst [vmem:[%s2567_s8 + $0xf8] sm:$0xff] %v1428_v24 }
 0x4b5   : > { %1926 = shalt.err (!%p1923_p7)
}
 0x4b6   : > { %s1927_s9 = scalar_lea.hbm %s2615_s5, 4096  ;;  %s1931_s6 = scalar_lea.hbm %s2679_s4, 8192 }
 0x4b7   : > { %p1928_p9 = scmp.ne.s32.totalorder %s2615_s5, %s1927_s9  ;;  %p1932_p5 = scmp.lt.u32.totalorder %s2615_s5, %s2679_s4 }
 0x4b8   : > { %p1933_p11 = scmp.lt.u32.totalorder %s1931_s6, %s1927_s9  ;;  %p1935_p4 = scmp.lt.u32.totalorder %s1927_s9, %s2615_s5 }
 0x4b9   : > { %p1929_p1 = pnand %p1928_p9, %p2115_p12 }
 0x4ba   : > { %p1934_p2 = por %p1933_p11, %p1932_p5 }
 0x4bb   : > { %p1930_p0 = pneg %p1929_p1 }
 0x4bc   : > { %p1936_p6 = por %p1935_p4, %p1934_p2 }
 0x4be   : > { %p1937_p8 = pnand %p1936_p6, %p1930_p0 }
 0x4c0   : > { %1940 = shalt.err (!%p1937_p8)
}
 0x4c1   : > { %s1994_s8 = smov 256   ;;  %s1995_s25 = smov 16  }
 0x4c2   : > { %1752 = dma.vmem_to_hbm [thread:$0]  (%p2115_p12), %s2617_s14, 4096, %s2615_s5, %s1462_s29, %s1994_s8, %s1994_s8, %s1995_s25  }
 0x4c3 PF: > { %s1491_s19 = sand.u32 1, %s1971_s15   ;;  %p2728_p10 = scmp.ne.s32.totalorder %s2695_s22, 0 }
 0x4c4   : > { %p2729_p13 = scmp.ge.s32.totalorder %s1983_s18, 2  ;;  %s1492_s20 = scalar_lea.sflag [#allocation4], %s1491_s19 }
 0x4c6   : > { %p1763_p3 = pnand %p2729_p13, %p2728_p10 }
 0x4c8   : > { %1966 = dma.done.wait (!%p1763_p3), %s1492_s20, 4096  }
 0x4c9   : > { %1968 = vsyncadd (!%p1763_p3), %s1492_s20, 4294963200  ;;  %p18_p7 = scmp.ge.s32.totalorder %s2077_s27, 4   ;;  %s2730_s15 = smov %s1975_s16 }
 0x4ca   : > { %s2731_s16 = smov %s1979_s17  ;;  %s2732_s17 = smov %s2111_s24 }
 0x4cb   : > { %s2733_s18 = smov %s2077_s27  ;;  %20 = sbr.rel (!%p18_p7) target bundleno = 6 (0x6), region = 85 }
 0x4d2   :  { %1497 = vsyncpa [#allocation3], 1 }
 0x4d3   :  { %1499 = vsyncpa [#allocation3 + $0x1], 1 }
 0x4d4   :  { %1500 = vsyncpa [#allocation6], 1 }
 0x4d5   :  { %1501 = vsyncpa [#allocation4], 1 }
 0x4d6   :  { %1503 = vsyncpa [#allocation4 + $0x1], 1 }

</bundles_post_ra>
